<compile_context>
chip_gen: v7x
topology: tpu7x:2x2x1
jax: 0.10.0
libtpu: 0.0.40
codegen_flags: <defaults>
</compile_context>

<pallas_src>
import math
import jax
import jax.numpy as jnp
from jax import lax
from jax.experimental import pallas as pl
from jax.experimental.pallas import tpu as pltpu

# Keep kernel and reference on the same f32-accurate matmul path.
jax.config.update("jax_default_matmul_precision", "highest")

# Small shapes consistent with the module's forward (seq model with embed dim D).
B, S, D = 2, 8, 32          # batch, seq len, input_dim
H = 4                       # num_heads
DH = D // H                 # head dim
F = 64                      # dim_feedforward

# Packed weight/bias slab column layout (prep-time packing, see prepare_kernel_params):
#   cols [0, 3D)        : W_qkv (Q columns pre-scaled by 1/sqrt(DH))      / bias row: b_qkv
#   cols [3D, 3D+D)     : zeros in weight rows                            / bias row: b2
#   cols [3D+D, 3D+D+F) : W_fused = Wo @ W1                               / bias row: b_fused
NQKV = 3 * D
OFF_B2 = NQKV
OFF_F = NQKV + D
SLAB_W = NQKV + D + F       # 192
SLAB_H = D + 1              # 32 weight rows + 1 bias row


def encoder_kernel(x_ref, wb_ref, w2_ref, out_ref, scores_sc, attn_sc):
    # Single invocation over the whole batch: x_ref holds the full (B*S, D) slab.
    x = x_ref[...]                                                      # (B*S, D)

    # --- fused QKV projection (1/sqrt(DH) already folded into the Q weight columns) ---
    w_qkv = wb_ref[0:D, 0:NQKV]                                         # (D, 3D)
    b_qkv = wb_ref[D:D + 1, 0:NQKV]                                     # (1, 3D)
    qkv = jnp.dot(x, w_qkv, preferred_element_type=jnp.float32) + b_qkv

    q = qkv[:, 0:D]
    k = qkv[:, D:2 * D]
    v = qkv[:, 2 * D:3 * D]

    # TODO(synk): attention-mask path not implemented (this forward is called with mask=None).

    # --- scores for every (batch, head) pair, written at sublane-aligned row offsets ---
    for b in range(B):
        qb = q[b * S:(b + 1) * S, :]
        kb = k[b * S:(b + 1) * S, :]
        for h in range(H):
            qh = qb[:, h * DH:(h + 1) * DH]                             # (S, DH)
            kh = kb[:, h * DH:(h + 1) * DH]                             # (S, DH)
            t = b * H + h
            # contract dim 1 of both operands -> no explicit kh.T / XLU transpose
            scores_sc[t * S:(t + 1) * S, :] = lax.dot_general(
                qh, kh, dimension_numbers=(((1,), (1,)), ((), ())),
                preferred_element_type=jnp.float32)

    # --- one batched, numerically-stable softmax over all (batch, head) tiles (exact div) ---
    s = scores_sc[...]                                                  # (B*H*S, S)
    s = s - jnp.max(s, axis=-1, keepdims=True)
    p = jnp.exp(s)
    p = p / jnp.sum(p, axis=-1, keepdims=True)

    # --- per-(batch, head) P @ V written directly at its static (row, lane) offset ---
    for b in range(B):
        vb = v[b * S:(b + 1) * S, :]
        for h in range(H):
            t = b * H + h
            ph = p[t * S:(t + 1) * S, :]                                # (S, S)
            vh = vb[:, h * DH:(h + 1) * DH]                             # (S, DH)
            attn_sc[b * S:(b + 1) * S, h * DH:(h + 1) * DH] = jnp.dot(
                ph, vh, preferred_element_type=jnp.float32)

    attn = attn_sc[...]                                                 # (B*S, D)

    # --- out-projection folded into FFN linear-1: (attn @ Wo + bo) @ W1 + b1 == attn @ Wf + bf ---
    w_f = wb_ref[0:D, OFF_F:OFF_F + F]                                  # (D, F)
    b_f = wb_ref[D:D + 1, OFF_F:OFF_F + F]                              # (1, F)
    hdn = jnp.dot(attn, w_f, preferred_element_type=jnp.float32) + b_f
    hdn = jnp.maximum(hdn, 0.0)

    # --- FFN linear-2 (dropout is identity at eval) ---
    b2 = wb_ref[D:D + 1, OFF_B2:OFF_B2 + D]                             # (1, D)
    y = jnp.dot(hdn, w2_ref[...], preferred_element_type=jnp.float32) + b2
    out_ref[...] = y.astype(out_ref.dtype)


def encoder_forward(x, wb_slab, w2):
    x2d = x.reshape(B * S, D)

    def full(shape):
        # full-array block, resident in VMEM for the single grid step
        return pl.BlockSpec(shape, lambda i: (0,) * len(shape))

    y2d = pl.pallas_call(
        encoder_kernel,
        out_shape=jax.ShapeDtypeStruct((B * S, D), jnp.float32),
        grid=(1,),
        in_specs=[
            full((B * S, D)),        # x, whole batch as one slab
            full((SLAB_H, SLAB_W)),  # packed [W_qkv | pad | W_fused] + bias row
            full((F, D)),            # W_2
        ],
        out_specs=full((B * S, D)),
        scratch_shapes=[
            pltpu.VMEM((B * H * S, S), jnp.float32),   # score slab (all heads / batches)
            pltpu.VMEM((B * S, D), jnp.float32),       # concat(head outputs)
        ],
        compiler_params=pltpu.CompilerParams(dimension_semantics=("arbitrary",)),
    )(x2d, wb_slab, w2)
    return y2d.reshape(B, S, D)


def prepare_kernel_params(params):
    """One-time parameter transform (done at init/prep time, NOT per forward call):
       - pre-scale the Q columns of W_qkv / b_qkv by 1/sqrt(DH)
       - fold the attention output projection into FFN linear-1
       - pack all weights + biases into a single (D+1, 4D+F) slab (plus W2)."""
    wqkv, bqkv, wo, bo, w1, b1, w2, b2 = params
    scale = jnp.concatenate([jnp.full((D,), 1.0 / math.sqrt(DH), jnp.float32),
                             jnp.ones((2 * D,), jnp.float32)])
    wqkv_s = wqkv * scale[None, :]
    bqkv_s = bqkv * scale[None, :]
    w_fused = wo @ w1                    # (D, F)
    b_fused = bo @ w1 + b1               # (1, F)
    w_rows = jnp.concatenate(
        [wqkv_s, jnp.zeros((D, D), jnp.float32), w_fused], axis=1)      # (D, 4D+F)
    b_row = jnp.concatenate([bqkv_s, b2, b_fused], axis=1)              # (1, 4D+F)
    wb_slab = jnp.concatenate([w_rows, b_row], axis=0)                  # (D+1, 4D+F)
    return wb_slab, w2


def reference(x, params):
    """Pure-JAX reference for numerical check (unfused parameters)."""
    wqkv, bqkv, wo, bo, w1, b1, w2, b2 = params
    qkv = x @ wqkv + bqkv[0]
    q, k, v = jnp.split(qkv, 3, axis=-1)
    sh = lambda t: t.reshape(B, S, H, DH).transpose(0, 2, 1, 3)
    q, k, v = sh(q), sh(k), sh(v)
    s = jnp.einsum('bhqd,bhkd->bhqk', q, k) / math.sqrt(DH)
    p = jax.nn.softmax(s, axis=-1)
    o = jnp.einsum('bhqk,bhkd->bhqd', p, v).transpose(0, 2, 1, 3).reshape(B, S, D)
    attn = o @ wo + bo[0]
    h = jax.nn.relu(attn @ w1 + b1[0])
    return h @ w2 + b2[0]


def init_params(key):
    ks = jax.random.split(key, 8)
    def lin(k, fan_in, shape):
        return (jax.random.normal(k, shape, jnp.float32) / math.sqrt(fan_in))
    wqkv = lin(ks[0], D, (D, 3 * D))
    bqkv = lin(ks[1], D, (1, 3 * D)) * 0.1
    wo = lin(ks[2], D, (D, D))
    bo = lin(ks[3], D, (1, D)) * 0.1
    w1 = lin(ks[4], D, (D, F))
    b1 = lin(ks[5], D, (1, F)) * 0.1
    w2 = lin(ks[6], F, (F, D))
    b2 = lin(ks[7], F, (1, D)) * 0.1
    return (wqkv, bqkv, wo, bo, w1, b1, w2, b2)


if __name__ == "__main__":
    key = jax.random.PRNGKey(0)
    kx, kp = jax.random.split(key)
    x = jax.random.normal(kx, (B, S, D), jnp.float32)
    params = init_params(kp)

    # One-time parameter prep (fold / scale / pack) — not part of the per-call wrapper.
    wb_slab, w2 = prepare_kernel_params(params)

    out = encoder_forward(x, wb_slab, w2)
    out = jax.block_until_ready(out)

    ref = reference(x, params)
    assert out.shape == (B, S, D)
    assert jnp.allclose(out, ref, atol=1e-3, rtol=1e-3), "mismatch vs JAX reference"
    print("KERNEL_OK")
</pallas_src>

<mosaic_0001>
module attributes {stable_mosaic.version = 11 : i64} {
  func.func @encoder_kernel(%arg0: i32, %arg1: memref<16x32xf32, #tpu.memory_space<vmem>>, %arg2: memref<33x192xf32, #tpu.memory_space<vmem>>, %arg3: memref<64x32xf32, #tpu.memory_space<vmem>>, %arg4: memref<16x32xf32, #tpu.memory_space<vmem>>, %arg5: memref<64x8xf32, #tpu.memory_space<vmem>>, %arg6: memref<16x32xf32, #tpu.memory_space<vmem>>) attributes {dimension_semantics = [#tpu.dimension_semantics<arbitrary>], iteration_bounds = array<i64: 1>, scalar_prefetch = 0 : i64, scratch_operands = 2 : i64, tpu.core_type = #tpu.core_type<tc>, window_params = [{pipeline_mode = #tpu.pipeline_mode<synchronous>, transform_indices = @transform_0, window_bounds = array<i64: 16, 32>}, {pipeline_mode = #tpu.pipeline_mode<synchronous>, transform_indices = @transform_1, window_bounds = array<i64: 33, 192>}, {pipeline_mode = #tpu.pipeline_mode<synchronous>, transform_indices = @transform_2, window_bounds = array<i64: 64, 32>}, {pipeline_mode = #tpu.pipeline_mode<synchronous>, transform_indices = @transform_3, window_bounds = array<i64: 16, 32>}]} {
    %c0 = arith.constant 0 : index
    %c0_0 = arith.constant 0 : index
    %0 = vector.load %arg1[%c0, %c0_0] : memref<16x32xf32, #tpu.memory_space<vmem>>, vector<16x32xf32>
    %c0_1 = arith.constant 0 : index
    %c0_2 = arith.constant 0 : index
    %1 = vector.load %arg2[%c0_1, %c0_2] : memref<33x192xf32, #tpu.memory_space<vmem>>, vector<32x96xf32>
    %c32 = arith.constant 32 : index
    %c0_3 = arith.constant 0 : index
    %2 = vector.load %arg2[%c32, %c0_3] : memref<33x192xf32, #tpu.memory_space<vmem>>, vector<1x96xf32>
    %cst = arith.constant dense<0.000000e+00> : vector<16x96xf32>
    %3 = tpu.matmul %0, %1, %cst {dimension_numbers = #tpu.dot_dimension_numbers<[1], [0], [0], [1], [0, 0, 1, 1], [], []>, precision = #tpu.contract_precision<fp32>} : vector<16x32xf32>, vector<32x96xf32>, vector<16x96xf32> -> vector<16x96xf32>
    %4 = vector.broadcast %2 : vector<1x96xf32> to vector<16x96xf32>
    %5 = arith.addf %3, %4 : vector<16x96xf32>
    %6 = vector.extract_strided_slice %5 {offsets = [0, 0], sizes = [16, 32], strides = [1, 1]} : vector<16x96xf32> to vector<16x32xf32>
    %7 = vector.extract_strided_slice %5 {offsets = [0, 32], sizes = [16, 32], strides = [1, 1]} : vector<16x96xf32> to vector<16x32xf32>
    %8 = vector.extract_strided_slice %5 {offsets = [0, 64], sizes = [16, 32], strides = [1, 1]} : vector<16x96xf32> to vector<16x32xf32>
    %9 = vector.extract_strided_slice %6 {offsets = [0, 0], sizes = [8, 32], strides = [1, 1]} : vector<16x32xf32> to vector<8x32xf32>
    %10 = vector.extract_strided_slice %7 {offsets = [0, 0], sizes = [8, 32], strides = [1, 1]} : vector<16x32xf32> to vector<8x32xf32>
    %11 = vector.extract_strided_slice %9 {offsets = [0, 0], sizes = [8, 8], strides = [1, 1]} : vector<8x32xf32> to vector<8x8xf32>
    %12 = vector.extract_strided_slice %10 {offsets = [0, 0], sizes = [8, 8], strides = [1, 1]} : vector<8x32xf32> to vector<8x8xf32>
    %cst_4 = arith.constant dense<0.000000e+00> : vector<8x8xf32>
    %13 = tpu.matmul %11, %12, %cst_4 {dimension_numbers = #tpu.dot_dimension_numbers<[1], [1], [0], [0], [0, 0, 1, 0], [], []>, precision = #tpu.contract_precision<fp32>} : vector<8x8xf32>, vector<8x8xf32>, vector<8x8xf32> -> vector<8x8xf32>
    %c0_5 = arith.constant 0 : index
    %c0_6 = arith.constant 0 : index
    %14 = vector.load %arg5[%c0_5, %c0_6] : memref<64x8xf32, #tpu.memory_space<vmem>>, vector<8x8xf32>
    tpu.vector_store %arg5[%c0_5, %c0_6], %13 {strides = array<i32>} : memref<64x8xf32, #tpu.memory_space<vmem>>, vector<8x8xf32>,
    %15 = vector.extract_strided_slice %9 {offsets = [0, 8], sizes = [8, 8], strides = [1, 1]} : vector<8x32xf32> to vector<8x8xf32>
    %16 = vector.extract_strided_slice %10 {offsets = [0, 8], sizes = [8, 8], strides = [1, 1]} : vector<8x32xf32> to vector<8x8xf32>
    %cst_7 = arith.constant dense<0.000000e+00> : vector<8x8xf32>
    %17 = tpu.matmul %15, %16, %cst_7 {dimension_numbers = #tpu.dot_dimension_numbers<[1], [1], [0], [0], [0, 0, 1, 0], [], []>, precision = #tpu.contract_precision<fp32>} : vector<8x8xf32>, vector<8x8xf32>, vector<8x8xf32> -> vector<8x8xf32>
    %c8 = arith.constant 8 : index
    %c0_8 = arith.constant 0 : index
    %18 = vector.load %arg5[%c8, %c0_8] : memref<64x8xf32, #tpu.memory_space<vmem>>, vector<8x8xf32>
    tpu.vector_store %arg5[%c8, %c0_8], %17 {strides = array<i32>} : memref<64x8xf32, #tpu.memory_space<vmem>>, vector<8x8xf32>,
    %19 = vector.extract_strided_slice %9 {offsets = [0, 16], sizes = [8, 8], strides = [1, 1]} : vector<8x32xf32> to vector<8x8xf32>
    %20 = vector.extract_strided_slice %10 {offsets = [0, 16], sizes = [8, 8], strides = [1, 1]} : vector<8x32xf32> to vector<8x8xf32>
    %cst_9 = arith.constant dense<0.000000e+00> : vector<8x8xf32>
    %21 = tpu.matmul %19, %20, %cst_9 {dimension_numbers = #tpu.dot_dimension_numbers<[1], [1], [0], [0], [0, 0, 1, 0], [], []>, precision = #tpu.contract_precision<fp32>} : vector<8x8xf32>, vector<8x8xf32>, vector<8x8xf32> -> vector<8x8xf32>
    %c16 = arith.constant 16 : index
    %c0_10 = arith.constant 0 : index
    %22 = vector.load %arg5[%c16, %c0_10] : memref<64x8xf32, #tpu.memory_space<vmem>>, vector<8x8xf32>
    tpu.vector_store %arg5[%c16, %c0_10], %21 {strides = array<i32>} : memref<64x8xf32, #tpu.memory_space<vmem>>, vector<8x8xf32>,
    %23 = vector.extract_strided_slice %9 {offsets = [0, 24], sizes = [8, 8], strides = [1, 1]} : vector<8x32xf32> to vector<8x8xf32>
    %24 = vector.extract_strided_slice %10 {offsets = [0, 24], sizes = [8, 8], strides = [1, 1]} : vector<8x32xf32> to vector<8x8xf32>
    %cst_11 = arith.constant dense<0.000000e+00> : vector<8x8xf32>
    %25 = tpu.matmul %23, %24, %cst_11 {dimension_numbers = #tpu.dot_dimension_numbers<[1], [1], [0], [0], [0, 0, 1, 0], [], []>, precision = #tpu.contract_precision<fp32>} : vector<8x8xf32>, vector<8x8xf32>, vector<8x8xf32> -> vector<8x8xf32>
    %c24 = arith.constant 24 : index
    %c0_12 = arith.constant 0 : index
    %26 = vector.load %arg5[%c24, %c0_12] : memref<64x8xf32, #tpu.memory_space<vmem>>, vector<8x8xf32>
    tpu.vector_store %arg5[%c24, %c0_12], %25 {strides = array<i32>} : memref<64x8xf32, #tpu.memory_space<vmem>>, vector<8x8xf32>,
    %27 = vector.extract_strided_slice %6 {offsets = [8, 0], sizes = [8, 32], strides = [1, 1]} : vector<16x32xf32> to vector<8x32xf32>
    %28 = vector.extract_strided_slice %7 {offsets = [8, 0], sizes = [8, 32], strides = [1, 1]} : vector<16x32xf32> to vector<8x32xf32>
    %29 = vector.extract_strided_slice %27 {offsets = [0, 0], sizes = [8, 8], strides = [1, 1]} : vector<8x32xf32> to vector<8x8xf32>
    %30 = vector.extract_strided_slice %28 {offsets = [0, 0], sizes = [8, 8], strides = [1, 1]} : vector<8x32xf32> to vector<8x8xf32>
    %cst_13 = arith.constant dense<0.000000e+00> : vector<8x8xf32>
    %31 = tpu.matmul %29, %30, %cst_13 {dimension_numbers = #tpu.dot_dimension_numbers<[1], [1], [0], [0], [0, 0, 1, 0], [], []>, precision = #tpu.contract_precision<fp32>} : vector<8x8xf32>, vector<8x8xf32>, vector<8x8xf32> -> vector<8x8xf32>
    %c32_14 = arith.constant 32 : index
    %c0_15 = arith.constant 0 : index
    %32 = vector.load %arg5[%c32_14, %c0_15] : memref<64x8xf32, #tpu.memory_space<vmem>>, vector<8x8xf32>
    tpu.vector_store %arg5[%c32_14, %c0_15], %31 {strides = array<i32>} : memref<64x8xf32, #tpu.memory_space<vmem>>, vector<8x8xf32>,
    %33 = vector.extract_strided_slice %27 {offsets = [0, 8], sizes = [8, 8], strides = [1, 1]} : vector<8x32xf32> to vector<8x8xf32>
    %34 = vector.extract_strided_slice %28 {offsets = [0, 8], sizes = [8, 8], strides = [1, 1]} : vector<8x32xf32> to vector<8x8xf32>
    %cst_16 = arith.constant dense<0.000000e+00> : vector<8x8xf32>
    %35 = tpu.matmul %33, %34, %cst_16 {dimension_numbers = #tpu.dot_dimension_numbers<[1], [1], [0], [0], [0, 0, 1, 0], [], []>, precision = #tpu.contract_precision<fp32>} : vector<8x8xf32>, vector<8x8xf32>, vector<8x8xf32> -> vector<8x8xf32>
    %c40 = arith.constant 40 : index
    %c0_17 = arith.constant 0 : index
    %36 = vector.load %arg5[%c40, %c0_17] : memref<64x8xf32, #tpu.memory_space<vmem>>, vector<8x8xf32>
    tpu.vector_store %arg5[%c40, %c0_17], %35 {strides = array<i32>} : memref<64x8xf32, #tpu.memory_space<vmem>>, vector<8x8xf32>,
    %37 = vector.extract_strided_slice %27 {offsets = [0, 16], sizes = [8, 8], strides = [1, 1]} : vector<8x32xf32> to vector<8x8xf32>
    %38 = vector.extract_strided_slice %28 {offsets = [0, 16], sizes = [8, 8], strides = [1, 1]} : vector<8x32xf32> to vector<8x8xf32>
    %cst_18 = arith.constant dense<0.000000e+00> : vector<8x8xf32>
    %39 = tpu.matmul %37, %38, %cst_18 {dimension_numbers = #tpu.dot_dimension_numbers<[1], [1], [0], [0], [0, 0, 1, 0], [], []>, precision = #tpu.contract_precision<fp32>} : vector<8x8xf32>, vector<8x8xf32>, vector<8x8xf32> -> vector<8x8xf32>
    %c48 = arith.constant 48 : index
    %c0_19 = arith.constant 0 : index
    %40 = vector.load %arg5[%c48, %c0_19] : memref<64x8xf32, #tpu.memory_space<vmem>>, vector<8x8xf32>
    tpu.vector_store %arg5[%c48, %c0_19], %39 {strides = array<i32>} : memref<64x8xf32, #tpu.memory_space<vmem>>, vector<8x8xf32>,
    %41 = vector.extract_strided_slice %27 {offsets = [0, 24], sizes = [8, 8], strides = [1, 1]} : vector<8x32xf32> to vector<8x8xf32>
    %42 = vector.extract_strided_slice %28 {offsets = [0, 24], sizes = [8, 8], strides = [1, 1]} : vector<8x32xf32> to vector<8x8xf32>
    %cst_20 = arith.constant dense<0.000000e+00> : vector<8x8xf32>
    %43 = tpu.matmul %41, %42, %cst_20 {dimension_numbers = #tpu.dot_dimension_numbers<[1], [1], [0], [0], [0, 0, 1, 0], [], []>, precision = #tpu.contract_precision<fp32>} : vector<8x8xf32>, vector<8x8xf32>, vector<8x8xf32> -> vector<8x8xf32>
    %c56 = arith.constant 56 : index
    %c0_21 = arith.constant 0 : index
    %44 = vector.load %arg5[%c56, %c0_21] : memref<64x8xf32, #tpu.memory_space<vmem>>, vector<8x8xf32>
    tpu.vector_store %arg5[%c56, %c0_21], %43 {strides = array<i32>} : memref<64x8xf32, #tpu.memory_space<vmem>>, vector<8x8xf32>,
    %c0_22 = arith.constant 0 : index
    %c0_23 = arith.constant 0 : index
    %45 = vector.load %arg5[%c0_22, %c0_23] : memref<64x8xf32, #tpu.memory_space<vmem>>, vector<64x8xf32>
    %cst_24 = arith.constant dense<0xFF800000> : vector<64xf32>
    %46 = vector.multi_reduction <maximumf>, %45, %cst_24 [1] : vector<64x8xf32> to vector<64xf32>
    %47 = vector.shape_cast %46 : vector<64xf32> to vector<64x1xf32>
    %48 = vector.broadcast %47 : vector<64x1xf32> to vector<64x8xf32>
    %49 = arith.subf %45, %48 : vector<64x8xf32>
    %50 = math.exp %49 : vector<64x8xf32>
    %cst_25 = arith.constant dense<0.000000e+00> : vector<64xf32>
    %51 = vector.multi_reduction <add>, %50, %cst_25 [1] : vector<64x8xf32> to vector<64xf32>
    %52 = vector.shape_cast %51 : vector<64xf32> to vector<64x1xf32>
    %53 = vector.broadcast %52 : vector<64x1xf32> to vector<64x8xf32>
    %54 = arith.divf %50, %53 : vector<64x8xf32>
    %55 = vector.extract_strided_slice %8 {offsets = [0, 0], sizes = [8, 32], strides = [1, 1]} : vector<16x32xf32> to vector<8x32xf32>
    %56 = vector.extract_strided_slice %54 {offsets = [0, 0], sizes = [8, 8], strides = [1, 1]} : vector<64x8xf32> to vector<8x8xf32>
    %57 = vector.extract_strided_slice %55 {offsets = [0, 0], sizes = [8, 8], strides = [1, 1]} : vector<8x32xf32> to vector<8x8xf32>
    %cst_26 = arith.constant dense<0.000000e+00> : vector<8x8xf32>
    %58 = tpu.matmul %56, %57, %cst_26 {dimension_numbers = #tpu.dot_dimension_numbers<[1], [0], [0], [1], [0, 0, 1, 1], [], []>, precision = #tpu.contract_precision<fp32>} : vector<8x8xf32>, vector<8x8xf32>, vector<8x8xf32> -> vector<8x8xf32>
    %c0_27 = arith.constant 0 : index
    %c0_28 = arith.constant 0 : index
    %59 = vector.load %arg6[%c0_27, %c0_28] : memref<16x32xf32, #tpu.memory_space<vmem>>, vector<8x8xf32>
    tpu.vector_store %arg6[%c0_27, %c0_28], %58 {strides = array<i32>} : memref<16x32xf32, #tpu.memory_space<vmem>>, vector<8x8xf32>,
    %60 = vector.extract_strided_slice %54 {offsets = [8, 0], sizes = [8, 8], strides = [1, 1]} : vector<64x8xf32> to vector<8x8xf32>
    %61 = vector.extract_strided_slice %55 {offsets = [0, 8], sizes = [8, 8], strides = [1, 1]} : vector<8x32xf32> to vector<8x8xf32>
    %cst_29 = arith.constant dense<0.000000e+00> : vector<8x8xf32>
    %62 = tpu.matmul %60, %61, %cst_29 {dimension_numbers = #tpu.dot_dimension_numbers<[1], [0], [0], [1], [0, 0, 1, 1], [], []>, precision = #tpu.contract_precision<fp32>} : vector<8x8xf32>, vector<8x8xf32>, vector<8x8xf32> -> vector<8x8xf32>
    %c0_30 = arith.constant 0 : index
    %c8_31 = arith.constant 8 : index
    %63 = vector.load %arg6[%c0_30, %c8_31] : memref<16x32xf32, #tpu.memory_space<vmem>>, vector<8x8xf32>
    tpu.vector_store %arg6[%c0_30, %c8_31], %62 {strides = array<i32>} : memref<16x32xf32, #tpu.memory_space<vmem>>, vector<8x8xf32>,
    %64 = vector.extract_strided_slice %54 {offsets = [16, 0], sizes = [8, 8], strides = [1, 1]} : vector<64x8xf32> to vector<8x8xf32>
    %65 = vector.extract_strided_slice %55 {offsets = [0, 16], sizes = [8, 8], strides = [1, 1]} : vector<8x32xf32> to vector<8x8xf32>
    %cst_32 = arith.constant dense<0.000000e+00> : vector<8x8xf32>
    %66 = tpu.matmul %64, %65, %cst_32 {dimension_numbers = #tpu.dot_dimension_numbers<[1], [0], [0], [1], [0, 0, 1, 1], [], []>, precision = #tpu.contract_precision<fp32>} : vector<8x8xf32>, vector<8x8xf32>, vector<8x8xf32> -> vector<8x8xf32>
    %c0_33 = arith.constant 0 : index
    %c16_34 = arith.constant 16 : index
    %67 = vector.load %arg6[%c0_33, %c16_34] : memref<16x32xf32, #tpu.memory_space<vmem>>, vector<8x8xf32>
    tpu.vector_store %arg6[%c0_33, %c16_34], %66 {strides = array<i32>} : memref<16x32xf32, #tpu.memory_space<vmem>>, vector<8x8xf32>,
    %68 = vector.extract_strided_slice %54 {offsets = [24, 0], sizes = [8, 8], strides = [1, 1]} : vector<64x8xf32> to vector<8x8xf32>
    %69 = vector.extract_strided_slice %55 {offsets = [0, 24], sizes = [8, 8], strides = [1, 1]} : vector<8x32xf32> to vector<8x8xf32>
    %cst_35 = arith.constant dense<0.000000e+00> : vector<8x8xf32>
    %70 = tpu.matmul %68, %69, %cst_35 {dimension_numbers = #tpu.dot_dimension_numbers<[1], [0], [0], [1], [0, 0, 1, 1], [], []>, precision = #tpu.contract_precision<fp32>} : vector<8x8xf32>, vector<8x8xf32>, vector<8x8xf32> -> vector<8x8xf32>
    %c0_36 = arith.constant 0 : index
    %c24_37 = arith.constant 24 : index
    %71 = vector.load %arg6[%c0_36, %c24_37] : memref<16x32xf32, #tpu.memory_space<vmem>>, vector<8x8xf32>
    tpu.vector_store %arg6[%c0_36, %c24_37], %70 {strides = array<i32>} : memref<16x32xf32, #tpu.memory_space<vmem>>, vector<8x8xf32>,
    %72 = vector.extract_strided_slice %8 {offsets = [8, 0], sizes = [8, 32], strides = [1, 1]} : vector<16x32xf32> to vector<8x32xf32>
    %73 = vector.extract_strided_slice %54 {offsets = [32, 0], sizes = [8, 8], strides = [1, 1]} : vector<64x8xf32> to vector<8x8xf32>
    %74 = vector.extract_strided_slice %72 {offsets = [0, 0], sizes = [8, 8], strides = [1, 1]} : vector<8x32xf32> to vector<8x8xf32>
    %cst_38 = arith.constant dense<0.000000e+00> : vector<8x8xf32>
    %75 = tpu.matmul %73, %74, %cst_38 {dimension_numbers = #tpu.dot_dimension_numbers<[1], [0], [0], [1], [0, 0, 1, 1], [], []>, precision = #tpu.contract_precision<fp32>} : vector<8x8xf32>, vector<8x8xf32>, vector<8x8xf32> -> vector<8x8xf32>
    %c8_39 = arith.constant 8 : index
    %c0_40 = arith.constant 0 : index
    %76 = vector.load %arg6[%c8_39, %c0_40] : memref<16x32xf32, #tpu.memory_space<vmem>>, vector<8x8xf32>
    tpu.vector_store %arg6[%c8_39, %c0_40], %75 {strides = array<i32>} : memref<16x32xf32, #tpu.memory_space<vmem>>, vector<8x8xf32>,
    %77 = vector.extract_strided_slice %54 {offsets = [40, 0], sizes = [8, 8], strides = [1, 1]} : vector<64x8xf32> to vector<8x8xf32>
    %78 = vector.extract_strided_slice %72 {offsets = [0, 8], sizes = [8, 8], strides = [1, 1]} : vector<8x32xf32> to vector<8x8xf32>
    %cst_41 = arith.constant dense<0.000000e+00> : vector<8x8xf32>
    %79 = tpu.matmul %77, %78, %cst_41 {dimension_numbers = #tpu.dot_dimension_numbers<[1], [0], [0], [1], [0, 0, 1, 1], [], []>, precision = #tpu.contract_precision<fp32>} : vector<8x8xf32>, vector<8x8xf32>, vector<8x8xf32> -> vector<8x8xf32>
    %c8_42 = arith.constant 8 : index
    %c8_43 = arith.constant 8 : index
    %80 = vector.load %arg6[%c8_42, %c8_43] : memref<16x32xf32, #tpu.memory_space<vmem>>, vector<8x8xf32>
    tpu.vector_store %arg6[%c8_42, %c8_43], %79 {strides = array<i32>} : memref<16x32xf32, #tpu.memory_space<vmem>>, vector<8x8xf32>,
    %81 = vector.extract_strided_slice %54 {offsets = [48, 0], sizes = [8, 8], strides = [1, 1]} : vector<64x8xf32> to vector<8x8xf32>
    %82 = vector.extract_strided_slice %72 {offsets = [0, 16], sizes = [8, 8], strides = [1, 1]} : vector<8x32xf32> to vector<8x8xf32>
    %cst_44 = arith.constant dense<0.000000e+00> : vector<8x8xf32>
    %83 = tpu.matmul %81, %82, %cst_44 {dimension_numbers = #tpu.dot_dimension_numbers<[1], [0], [0], [1], [0, 0, 1, 1], [], []>, precision = #tpu.contract_precision<fp32>} : vector<8x8xf32>, vector<8x8xf32>, vector<8x8xf32> -> vector<8x8xf32>
    %c8_45 = arith.constant 8 : index
    %c16_46 = arith.constant 16 : index
    %84 = vector.load %arg6[%c8_45, %c16_46] : memref<16x32xf32, #tpu.memory_space<vmem>>, vector<8x8xf32>
    tpu.vector_store %arg6[%c8_45, %c16_46], %83 {strides = array<i32>} : memref<16x32xf32, #tpu.memory_space<vmem>>, vector<8x8xf32>,
    %85 = vector.extract_strided_slice %54 {offsets = [56, 0], sizes = [8, 8], strides = [1, 1]} : vector<64x8xf32> to vector<8x8xf32>
    %86 = vector.extract_strided_slice %72 {offsets = [0, 24], sizes = [8, 8], strides = [1, 1]} : vector<8x32xf32> to vector<8x8xf32>
    %cst_47 = arith.constant dense<0.000000e+00> : vector<8x8xf32>
    %87 = tpu.matmul %85, %86, %cst_47 {dimension_numbers = #tpu.dot_dimension_numbers<[1], [0], [0], [1], [0, 0, 1, 1], [], []>, precision = #tpu.contract_precision<fp32>} : vector<8x8xf32>, vector<8x8xf32>, vector<8x8xf32> -> vector<8x8xf32>
    %c8_48 = arith.constant 8 : index
    %c24_49 = arith.constant 24 : index
    %88 = vector.load %arg6[%c8_48, %c24_49] : memref<16x32xf32, #tpu.memory_space<vmem>>, vector<8x8xf32>
    tpu.vector_store %arg6[%c8_48, %c24_49], %87 {strides = array<i32>} : memref<16x32xf32, #tpu.memory_space<vmem>>, vector<8x8xf32>,
    %c0_50 = arith.constant 0 : index
    %c0_51 = arith.constant 0 : index
    %89 = vector.load %arg6[%c0_50, %c0_51] : memref<16x32xf32, #tpu.memory_space<vmem>>, vector<16x32xf32>
    %c0_52 = arith.constant 0 : index
    %c128 = arith.constant 128 : index
    %90 = vector.load %arg2[%c0_52, %c128] : memref<33x192xf32, #tpu.memory_space<vmem>>, vector<32x64xf32>
    %c32_53 = arith.constant 32 : index
    %c128_54 = arith.constant 128 : index
    %91 = vector.load %arg2[%c32_53, %c128_54] : memref<33x192xf32, #tpu.memory_space<vmem>>, vector<1x64xf32>
    %cst_55 = arith.constant dense<0.000000e+00> : vector<16x64xf32>
    %92 = tpu.matmul %89, %90, %cst_55 {dimension_numbers = #tpu.dot_dimension_numbers<[1], [0], [0], [1], [0, 0, 1, 1], [], []>, precision = #tpu.contract_precision<fp32>} : vector<16x32xf32>, vector<32x64xf32>, vector<16x64xf32> -> vector<16x64xf32>
    %93 = vector.broadcast %91 : vector<1x64xf32> to vector<16x64xf32>
    %94 = arith.addf %92, %93 : vector<16x64xf32>
    %cst_56 = arith.constant 0.000000e+00 : f32
    %95 = vector.broadcast %cst_56 : f32 to vector<16x64xf32>
    %96 = arith.maximumf %94, %95 : vector<16x64xf32>
    %c32_57 = arith.constant 32 : index
    %c96 = arith.constant 96 : index
    %97 = vector.load %arg2[%c32_57, %c96] : memref<33x192xf32, #tpu.memory_space<vmem>>, vector<1x32xf32>
    %c0_58 = arith.constant 0 : index
    %c0_59 = arith.constant 0 : index
    %98 = vector.load %arg3[%c0_58, %c0_59] : memref<64x32xf32, #tpu.memory_space<vmem>>, vector<64x32xf32>
    %cst_60 = arith.constant dense<0.000000e+00> : vector<16x32xf32>
    %99 = tpu.matmul %96, %98, %cst_60 {dimension_numbers = #tpu.dot_dimension_numbers<[1], [0], [0], [1], [0, 0, 1, 1], [], []>, precision = #tpu.contract_precision<fp32>} : vector<16x64xf32>, vector<64x32xf32>, vector<16x32xf32> -> vector<16x32xf32>
    %100 = vector.broadcast %97 : vector<1x32xf32> to vector<16x32xf32>
    %101 = arith.addf %99, %100 : vector<16x32xf32>
    %c0_61 = arith.constant 0 : index
    %c0_62 = arith.constant 0 : index
    %102 = vector.load %arg4[%c0_61, %c0_62] : memref<16x32xf32, #tpu.memory_space<vmem>>, vector<16x32xf32>
    tpu.vector_store %arg4[%c0_61, %c0_62], %101 {strides = array<i32>} : memref<16x32xf32, #tpu.memory_space<vmem>>, vector<16x32xf32>,
    return
  }
  func.func @transform_0(%arg0: i32) -> (i32, i32) {
    %c0_i32 = arith.constant 0 : i32
    %c0_i32_0 = arith.constant 0 : i32
    %c0_i32_1 = arith.constant 0 : i32
    return %c0_i32, %c0_i32_0 : i32, i32
  }
  func.func @transform_1(%arg0: i32) -> (i32, i32) {
    %c0_i32 = arith.constant 0 : i32
    %c0_i32_0 = arith.constant 0 : i32
    %c0_i32_1 = arith.constant 0 : i32
    return %c0_i32, %c0_i32_0 : i32, i32
  }
  func.func @transform_2(%arg0: i32) -> (i32, i32) {
    %c0_i32 = arith.constant 0 : i32
    %c0_i32_0 = arith.constant 0 : i32
    %c0_i32_1 = arith.constant 0 : i32
    return %c0_i32, %c0_i32_0 : i32, i32
  }
  func.func @transform_3(%arg0: i32) -> (i32, i32) {
    %c0_i32 = arith.constant 0 : i32
    %c0_i32_0 = arith.constant 0 : i32
    %c0_i32_1 = arith.constant 0 : i32
    return %c0_i32, %c0_i32_0 : i32, i32
  }
}

</mosaic_0001>

<bundles_post_ra>
// kernel: tpu_custom_call.1
= control target key start
LH: loop header
LB: loop body
LE: loop exit
PB: predicated region body
PF: predicated region fallthrough
CT: control target
= control target key end

     0   :  { %vm22_vm0 = vcmask 261120   ;;  %s11495_s0 = inlined_call_operand.vmem [shape: f32[16,32], index: 0, kind: input, shape index: {}]   ;;  %s11496_s1 = inlined_call_operand.vmem [shape: f32[33,192], index: 1, kind: input, shape index: {}]   ;;  %s11497_s2 = inlined_call_operand.vmem [shape: f32[64,32], index: 2, kind: input, shape index: {}]   ;;  %s11498_s3 = inlined_call_operand.hbm [shape: f32[16,32], index: 3, kind: output, shape index: {}]  }
   0x1   :  { %v17_v0 = vld [vmem:[%s11496_s1] sm:$0xff]  ;;  %v18_v1 = vld [vmem:[%s11496_s1 + $0x10] sm:$0xff]  ;;  %v16_v8 = vld [vmem:[%s11495_s0 + $0x8] sm:$0xff] }
   0x2   :  { %v19_v2 = vld [vmem:[%s11496_s1 + $0x20] sm:$0xff]  ;;  %v30_v3 = vand.u32 4294901760, %v17_v0  ;;  %v33_v4 = vand.u32 4294901760, %v18_v1  ;;  %v20_v5 = vld [vmem:[%s11496_s1 + $0x30] sm:$0xff]  ;;  %v27_v11 = vsel %vm22_vm0, %v16_v8, 0 }
   0x3   :  { %v36_v6 = vand.u32 4294901760, %v19_v2  ;;  %v15_v7 = vld [vmem:[%s11495_s0] sm:$0xff]  ;;  %v39_v9 = vand.u32 4294901760, %v20_v5  ;;  %v10679_v14 = vand.u32 4294901760, %v27_v11 }
   0x4   :  { %v24_v10 = vsel %vm22_vm0, %v15_v7, 0  ;;  %v10675_v12 = vpack.c.bf16 %v33_v4, %v30_v3  ;;  %v120_v15 = vsub.f32 %v17_v0, %v30_v3 }
   0x5   :  { %v10677_v13 = vand.u32 4294901760, %v24_v10 }
   0x6   :  { %8 = vsyncpa [#allocation5], 0  ;;  %v10681_v16 = vpack.c.bf16 %v39_v9, %v36_v6  ;;  %v127_v17 = vsub.f32 %v18_v1, %v33_v4  ;;  %v134_v18 = vsub.f32 %v19_v2, %v36_v6  ;;  %v141_v19 = vsub.f32 %v20_v5, %v39_v9  ;;  %10155 = vmatprep.subr.bf16.mxu0 %v10675_v12  ;;  %v21_v47 = vld [vmem:[%s11496_s1 + $0x40] ss:$0 sm:$0xff]  ;;  %s10618_s25 = smov 88   ;;  %s10619_s26 = smov 96  }
   0x7   :  { %v99_v20 = vsub.f32 %v24_v10, %v10677_v13  ;;  %v109_v21 = vsub.f32 %v27_v11, %v10679_v14  ;;  %v121_v22 = vand.u32 4294901760, %v120_v15  ;;  %10157 = vmatpush3.bf16.msra.mxu0 %v10675_v12  ;;  %v10616_v46 = vmov 0.0   ;;  %s10620_s27 = smov 112   ;;  %s10621_s28 = smov 120  }
   0x8   :  { %v128_v23 = vand.u32 4294901760, %v127_v17  ;;  %v135_v24 = vand.u32 4294901760, %v134_v18  ;;  %v142_v25 = vand.u32 4294901760, %v141_v19  ;;  %10159 = vmatprep.subr.bf16.mxu0 %v10681_v16  ;;  %v10170_v42 = vpack.c.bf16 %v127_v17, %v120_v15  ;;  %9504 = vmatprep.subr.mxu1 %v10616_v46  ;;  %s10622_s29 = smov 80   ;;  %s10623_s30 = smov 104  }
   0x9   :  { %v100_v26 = vand.u32 4294901760, %v99_v20  ;;  %v110_v27 = vand.u32 4294901760, %v109_v21  ;;  %v122_v28 = vsub.f32 %v120_v15, %v121_v22  ;;  %v10174_v43 = vpack.c.bf16 %v141_v19, %v134_v18  ;;  %s10624_s4 = smov 72   ;;  %s10625_s5 = smov 64  }
   0xa   :  { %v129_v29 = vsub.f32 %v127_v17, %v128_v23  ;;  %v136_v30 = vsub.f32 %v134_v18, %v135_v24  ;;  %v143_v31 = vsub.f32 %v141_v19, %v142_v25  ;;  %v10186_v44 = vpack.c.bf16 %v128_v23, %v121_v22  ;;  %s10626_s6 = smov 48   ;;  %s10627_s7 = smov 56  }
   0xb   :  { %v101_v32 = vsub.f32 %v99_v20, %v100_v26  ;;  %v111_v33 = vsub.f32 %v109_v21, %v110_v27  ;;  %v123_v34 = vand.u32 4294901760, %v122_v28  ;;  %10161 = vmatpush3.bf16.msra.mxu0 %v10681_v16  ;;  %v10190_v45 = vpack.c.bf16 %v142_v25, %v135_v24  ;;  %s10628_s8 = smov 40   ;;  %s10629_s9 = smov 8  }
   0xc   :  { %v130_v35 = vand.u32 4294901760, %v129_v29  ;;  %v137_v36 = vand.u32 4294901760, %v136_v30  ;;  %v144_v37 = vand.u32 4294901760, %v143_v31  ;;  %vm10617_vm1 = vmmov 0   ;;  %s10630_s10 = smov 16   ;;  %s10631_s11 = smov 24  }
   0xd   :  { %v102_v38 = vand.u32 4294901760, %v101_v32  ;;  %v112_v39 = vand.u32 4294901760, %v111_v33  ;;  %9506 = vmatprep.mubr.msk.f32.mxu1 %vm10617_vm1, %v10616_v46  ;;  %vm560_vm2 = vcmask 64512   ;;  %vm5201_vm3 = vcmask 130112  }
   0xe   :  { %v10162_v40 = vpack.c.bf16 %v130_v35, %v123_v34  ;;  %v10166_v41 = vpack.c.bf16 %v144_v37, %v137_v36  ;;  %vm5659_vm4 = vcmask 195712   ;;  %vm6117_vm5 = vcmask 261312  }
   0xf   :  { %9436 = vmatprep.mubr.f32.mxu0 %v102_v38  ;;  %vm8499_vm6 = vcmask 523264  }
  0x10   :  { %9437 = vmatmul.mubr.f32.vlgmr.msra.gmra.mrb[0].mxu0 %v112_v39  ;;  %10163 = vmatprep.subr.bf16.mxu0 %v10162_v40 }
  0x11   :  { %10165 = vmatpush3.bf16.msra.mxu0 %v10162_v40  ;;  %9447 = vmatprep.mubr.f32.mxu0 %v10677_v13 }
  0x12   :  { %10167 = vmatprep.subr.bf16.mxu0 %v10166_v41 }
  0x15   :  { %10169 = vmatpush3.bf16.msra.mxu0 %v10166_v41 }
  0x16   :  { %10171 = vmatprep.subr.bf16.mxu0 %v10170_v42 }
  0x18   :  { %9448 = vmatmul.mubr.f32.vlgmr.msra.gmra.mrb[0].mxu0 %v10679_v14 }
  0x19   :  { %10173 = vmatpush3.bf16.msra.mxu0 %v10170_v42  ;;  %9458 = vmatprep.mubr.f32.mxu0 %v99_v20 }
  0x1a   :  { %10175 = vmatprep.subr.bf16.mxu0 %v10174_v43 }
  0x1d   :  { %10177 = vmatpush3.bf16.msra.mxu0 %v10174_v43 }
  0x1e   :  { %10179 = vmatprep.subr.bf16.mxu0 %v10675_v12 }
  0x20   :  { %9459 = vmatmul.mubr.f32.vlgmr.msra.gmra.mrb[0].mxu0 %v109_v21 }
  0x21   :  { %10181 = vmatpush3.bf16.msra.mxu0 %v10675_v12  ;;  %9469 = vmatprep.mubr.f32.mxu0 %v100_v26 }
  0x22   :  { %10183 = vmatprep.subr.bf16.mxu0 %v10681_v16 }
  0x25   :  { %10185 = vmatpush3.bf16.msra.mxu0 %v10681_v16 }
  0x26   :  { %10187 = vmatprep.subr.bf16.mxu0 %v10186_v44 }
  0x28   :  { %9470 = vmatmul.mubr.f32.vlgmr.msra.gmra.mrb[0].mxu0 %v110_v27 }
  0x29   :  { %10189 = vmatpush3.bf16.msra.mxu0 %v10186_v44  ;;  %9480 = vmatprep.mubr.f32.mxu0 %v10677_v13 }
  0x2a   :  { %10191 = vmatprep.subr.bf16.mxu0 %v10190_v45 }
  0x2d   :  { %10193 = vmatpush3.bf16.msra.mxu0 %v10190_v45 }
  0x2e   :  { %10195 = vmatprep.subr.bf16.mxu0 %v10675_v12 }
  0x30   :  { %9481 = vmatmul.mubr.f32.vlgmr.msra.gmra.mrb[0].mxu0 %v10679_v14 }
  0x31   :  { %10197 = vmatpush3.bf16.msra.mxu0 %v10675_v12  ;;  %9491 = vmatprep.mubr.f32.mxu0 %v10677_v13 }
  0x32   :  { %10199 = vmatprep.subr.bf16.mxu0 %v10681_v16 }
  0x35   :  { %10201 = vmatpush3.bf16.msra.mxu0 %v10681_v16 }
  0x36   :  { %9494 = vmatprep.subr.mxu0 %v10616_v46 }
  0x38   :  { %9492 = vmatmul.mubr.f32.vlgmr.msra.gmra.mrb[0].mxu0 %v10679_v14 }
  0x39   :  { %9496 = vmatprep.mubr.msk.f32.mxu0 %vm10617_vm1, %v10616_v46 }
 0x10b   :  { %v9493_v48 = vpop.f32.mrb[0].mxu0 }
 0x10c   :  { %v547_v49 = vpop.f32.mrb[1].mxu0  ;;  %v10720_v51 = vadd.f32 %v9493_v48, %v21_v47 }
 0x10d   :  { %v10712_v50 = vadd.f32 %v547_v49, %v21_v47 }
 0x10e   :  { %v2380_v32 = vsel %vm560_vm2, %v10720_v51, 0 }
 0x10f   :  { %1014 = vrot.lane.b32.xlu1 %v10712_v50, %s10618_s25  ;;  %558 = vrot.lane.b32.xlu0 %v10712_v50, %s10619_s26  ;;  %v561_v52 = vsel %vm560_vm2, %v10712_v50, 0  ;;  %v10811_v34 = vand.u32 4294901760, %v2380_v32 }
 0x110   :  { %v10732_v53 = vand.u32 4294901760, %v561_v52 }
 0x111   :  { %v10820_v36 = vsub.f32 %v2380_v32, %v10811_v34 }
 0x112   :  { %v632_v54 = vsub.f32 %v561_v52, %v10732_v53 }
 0x113   :  { %1467 = vrot.lane.b32.xlu1 %v10712_v50, %s10620_s27  ;;  %1012 = vrot.lane.b32.xlu0 %v10712_v50, %s10621_s28  ;;  %v2452_v38 = vand.u32 4294901760, %v10820_v36 }
 0x114   :  { %v633_v55 = vand.u32 4294901760, %v632_v54 }
 0x115   :  { %v2453_v40 = vsub.f32 %v10820_v36, %v2452_v38 }
 0x116   :  { %v634_v59 = vsub.f32 %v632_v54, %v633_v55 }
 0x117   :  { %1469 = vrot.lane.b32.xlu1 %v10712_v50, %s10622_s29  ;;  %1922 = vrot.lane.b32.xlu0 %v10712_v50, %s10623_s30  ;;  %v2454_v44 = vand.u32 4294901760, %v2453_v40 }
 0x118   :  { %v635_v0 = vand.u32 4294901760, %v634_v59 }
 0x11b   :  { %2831 = vrot.lane.b32.xlu1 %v10720_v51, %s10621_s28  ;;  %1924 = vrot.lane.b32.xlu0 %v10712_v50, %s10624_s4 }
 0x11f   :  { %2833 = vrot.lane.b32.xlu1 %v10720_v51, %s10618_s25  ;;  %2378 = vrot.lane.b32.xlu0 %v10720_v51, %s10619_s26 }
 0x123   :  { %3741 = vrot.lane.b32.xlu1 %v10720_v51, %s10623_s30  ;;  %3286 = vrot.lane.b32.xlu0 %v10720_v51, %s10620_s27 }
 0x127   :  { %3743 = vrot.lane.b32.xlu1 %v10720_v51, %s10624_s4  ;;  %3288 = vrot.lane.b32.xlu0 %v10720_v51, %s10622_s29 }
 0x181   :  { %v1015_v56 = vpop.permute.xlu1 %1014  ;;  %v559_v57 = vpop.permute.xlu0 %558 }
 0x182   :  { %v563_v58 = vsel %vm560_vm2, %v559_v57, 0  ;;  %v1018_v15 = vsel %vm560_vm2, %v1015_v56, 0 }
 0x183   :  { %v566_v60 = vand.u32 4294901760, %v563_v58  ;;  %v10770_v20 = vand.u32 4294901760, %v1018_v15 }
 0x185   :  { %v643_v61 = vsub.f32 %v563_v58, %v566_v60  ;;  %v1468_v62 = vpop.permute.xlu1 %1467  ;;  %9495 = vmatpush3.xpose.msra.mxu0 %v566_v60  ;;  %v1013_v11 = vpop.permute.xlu0 %1012  ;;  %v10777_v22 = vsub.f32 %v1018_v15, %v10770_v20 }
 0x186   :  { %v1471_v63 = vsel %vm560_vm2, %v1468_v62, 0  ;;  %9499 = vmatprep.subr.mxu0 %v10616_v46  ;;  %v1016_v14 = vsel %vm560_vm2, %v1013_v11, 0 }
 0x187   :  { %v644_v1 = vand.u32 4294901760, %v643_v61  ;;  %v10738_v2 = vand.u32 4294901760, %v1471_v63  ;;  %9505 = vmatpush3.xpose.msra.mxu1 %v643_v61  ;;  %v10767_v18 = vand.u32 4294901760, %v1016_v14  ;;  %v1099_v24 = vand.u32 4294901760, %v10777_v22 }
 0x188   :  { %9497 = vmatmul.mubr.f32.vlgmr.msra.gmra.mrb[2].mxu0 %v635_v0  ;;  %9509 = vmatprep.subr.mxu1 %v10616_v46 }
 0x189   :  { %v645_v3 = vsub.f32 %v643_v61, %v644_v1  ;;  %v10742_v4 = vsub.f32 %v1471_v63, %v10738_v2  ;;  %v1470_v5 = vpop.permute.xlu1 %1469  ;;  %9501 = vmatprep.mubr.msk.f32.mxu0 %vm10617_vm1, %v10616_v46  ;;  %v1087_v21 = vsub.f32 %v1016_v14, %v10767_v18  ;;  %v1923_v25 = vpop.permute.xlu0 %1922  ;;  %v1100_v27 = vsub.f32 %v10777_v22, %v1099_v24 }
 0x18a   :  { %v1473_v6 = vsel %vm560_vm2, %v1470_v5, 0  ;;  %9507 = vmatmul.mubr.f32.vlgmr.msra.gmra.mrb[0].mxu1 %v632_v54  ;;  %v1926_v42 = vsel %vm560_vm2, %v1923_v25, 0 }
 0x18b   :  { %v646_v7 = vand.u32 4294901760, %v645_v3  ;;  %v1543_v8 = vand.u32 4294901760, %v10742_v4  ;;  %9510 = vmatpush3.xpose.msra.mxu1 %v566_v60  ;;  %9511 = vmatprep.mubr.msk.f32.mxu1 %vm10617_vm1, %v10616_v46  ;;  %v10750_v9 = vand.u32 4294901760, %v1473_v6  ;;  %v1088_v23 = vand.u32 4294901760, %v1087_v21 }
 0x18c   :  { %9514 = vmatprep.subr.mxu1 %v10616_v46  ;;  %v1101_v30 = vand.u32 4294901760, %v1100_v27  ;;  %v10847_v47 = vand.u32 4294901760, %v1926_v42 }
 0x18d   :  { %9500 = vmatpush3.xpose.msra.mxu0 %v646_v7  ;;  %v1544_v10 = vsub.f32 %v10742_v4, %v1543_v8  ;;  %v1553_v12 = vsub.f32 %v1473_v6, %v10750_v9  ;;  %v1089_v26 = vsub.f32 %v1087_v21, %v1088_v23  ;;  %v1925_v28 = vpop.permute.xlu0 %1924  ;;  %v2832_v3 = vpop.permute.xlu1 %2831 }
 0x18e   :  { %9554 = vmatprep.subr.mxu0 %v10616_v46  ;;  %v1928_v43 = vsel %vm560_vm2, %v1925_v28, 0  ;;  %v10856_v49 = vsub.f32 %v1926_v42, %v10847_v47 }
 0x18f   :  { %v1554_v13 = vand.u32 4294901760, %v1553_v12  ;;  %v1545_v16 = vand.u32 4294901760, %v1544_v10  ;;  %v1090_v29 = vand.u32 4294901760, %v1089_v26  ;;  %v10850_v48 = vand.u32 4294901760, %v1928_v43 }
 0x190   :  { %9502 = vmatmul.mubr.f32.vlgmr.msra.gmra.mrb[2].mxu0 %v10732_v53 }
 0x191   :  { %9555 = vmatpush3.xpose.msra.mxu0 %v10750_v9  ;;  %9556 = vmatprep.mubr.msk.f32.mxu0 %vm10617_vm1, %v10616_v46  ;;  %v1555_v17 = vsub.f32 %v1553_v12, %v1554_v13  ;;  %v2379_v31 = vpop.permute.xlu0 %2378  ;;  %v10859_v52 = vsub.f32 %v1928_v43, %v10850_v48  ;;  %v2834_v7 = vpop.permute.xlu1 %2833 }
 0x192   :  { %9512 = vmatmul.mubr.f32.vlgmr.msra.gmra.mrb[0].mxu1 %v633_v55  ;;  %9559 = vmatprep.subr.mxu0 %v10616_v46  ;;  %v2382_v33 = vsel %vm560_vm2, %v2379_v31, 0  ;;  %v2837_v10 = vsel %vm560_vm2, %v2834_v7, 0 }
 0x193   :  { %9515 = vmatpush3.xpose.msra.mxu1 %v644_v1  ;;  %9516 = vmatprep.mubr.msk.f32.mxu1 %vm10617_vm1, %v10616_v46  ;;  %v1556_v19 = vand.u32 4294901760, %v1555_v17  ;;  %v10813_v35 = vand.u32 4294901760, %v2382_v33  ;;  %v2009_v54 = vand.u32 4294901760, %v10859_v52  ;;  %v2840_v14 = vand.u32 4294901760, %v2837_v10 }
 0x194   :  { %9557 = vmatmul.mubr.f32.vlgmr.msra.gmra.mrb[4].mxu0 %v1545_v16  ;;  %9519 = vmatprep.subr.mxu1 %v10616_v46 }
 0x195   :  { %9561 = vmatprep.mubr.msk.f32.mxu0 %vm10617_vm1, %v10616_v46  ;;  %9560 = vmatpush3.xpose.msra.mxu0 %v1556_v19  ;;  %v10823_v37 = vsub.f32 %v2382_v33, %v10813_v35  ;;  %v2010_v56 = vsub.f32 %v10859_v52, %v2009_v54  ;;  %v3287_v57 = vpop.permute.xlu0 %3286  ;;  %v2917_v16 = vsub.f32 %v2837_v10, %v2840_v14 }
 0x196   :  { %9564 = vmatprep.subr.mxu0 %v10616_v46  ;;  %v3290_v61 = vsel %vm560_vm2, %v3287_v57, 0 }
 0x197   :  { %v2463_v39 = vand.u32 4294901760, %v10823_v37  ;;  %v2011_v59 = vand.u32 4294901760, %v2010_v56  ;;  %v10892_v63 = vand.u32 4294901760, %v3290_v61 }
 0x199   :  { %v2464_v41 = vsub.f32 %v10823_v37, %v2463_v39  ;;  %v3361_v1 = vsub.f32 %v3290_v61, %v10892_v63 }
 0x19a   :  { %9517 = vmatmul.mubr.f32.vlgmr.msra.gmra.mrb[0].mxu1 %v10732_v53 }
 0x19b   :  { %9520 = vmatpush3.xpose.msra.mxu1 %v566_v60  ;;  %9521 = vmatprep.mubr.msk.f32.mxu1 %vm10617_vm1, %v10616_v46  ;;  %v2465_v45 = vand.u32 4294901760, %v2464_v41  ;;  %v3289_v60 = vpop.permute.xlu0 %3288 }
 0x19c   :  { %9562 = vmatmul.mubr.f32.vlgmr.msra.gmra.mrb[4].mxu0 %v10738_v2  ;;  %9524 = vmatprep.subr.mxu1 %v10616_v46  ;;  %v3292_v62 = vsel %vm560_vm2, %v3289_v60, 0 }
 0x19d   :  { %9565 = vmatpush3.xpose.msra.mxu0 %v1553_v12  ;;  %9566 = vmatprep.mubr.msk.f32.mxu0 %vm10617_vm1, %v10616_v46  ;;  %v10896_v0 = vand.u32 4294901760, %v3292_v62 }
 0x19e   :  { %9569 = vmatprep.subr.mxu0 %v10616_v46 }
 0x1a2   :  { %9522 = vmatmul.mubr.f32.vlgmr.msra.gmra.mrb[0].mxu1 %v10732_v53  ;;  %v1998_v53 = vand.u32 4294901760, %v10856_v49 }
 0x1a3   :  { %9525 = vmatpush3.xpose.msra.mxu1 %v10770_v20  ;;  %9526 = vmatprep.mubr.msk.f32.mxu1 %vm10617_vm1, %v10616_v46 }
 0x1a4   :  { %9567 = vmatmul.mubr.f32.vlgmr.msra.gmra.mrb[4].mxu0 %v10742_v4  ;;  %9529 = vmatprep.subr.mxu1 %v10616_v46  ;;  %v1999_v55 = vsub.f32 %v10856_v49, %v1998_v53  ;;  %v3362_v4 = vand.u32 4294901760, %v3361_v1 }
 0x1a5   :  { %9570 = vmatpush3.xpose.msra.mxu0 %v10750_v9  ;;  %9571 = vmatprep.mubr.msk.f32.mxu0 %vm10617_vm1, %v10616_v46 }
 0x1a6   :  { %9527 = vmatmul.mubr.f32.vlgmr.msra.gmra.mrb[2].mxu1 %v1090_v29  ;;  %9574 = vmatprep.subr.mxu0 %v10616_v46  ;;  %v2000_v58 = vand.u32 4294901760, %v1999_v55  ;;  %v3363_v6 = vsub.f32 %v3361_v1, %v3362_v4 }
 0x1a7   :  { %9530 = vmatpush3.xpose.msra.mxu1 %v1101_v30  ;;  %9531 = vmatprep.mubr.msk.f32.mxu1 %vm10617_vm1, %v10616_v46 }
 0x1a8   :  { %9534 = vmatprep.subr.mxu1 %v10616_v46  ;;  %v3364_v11 = vand.u32 4294901760, %v3363_v6 }
 0x1ac   :  { %9572 = vmatmul.mubr.f32.vlgmr.msra.gmra.mrb[4].mxu0 %v1543_v8 }
 0x1ad   :  { %9575 = vmatpush3.xpose.msra.mxu0 %v1554_v13  ;;  %9576 = vmatprep.mubr.msk.f32.mxu0 %vm10617_vm1, %v10616_v46 }
 0x1ae   :  { %9532 = vmatmul.mubr.f32.vlgmr.msra.gmra.mrb[2].mxu1 %v10767_v18  ;;  %9579 = vmatprep.subr.mxu0 %v10616_v46 }
 0x1af   :  { %9535 = vmatpush3.xpose.msra.mxu1 %v10777_v22  ;;  %9536 = vmatprep.mubr.msk.f32.mxu1 %vm10617_vm1, %v10616_v46 }
 0x1b0   :  { %9539 = vmatprep.subr.mxu1 %v10616_v46 }
 0x1b4   :  { %9577 = vmatmul.mubr.f32.vlgmr.msra.gmra.mrb[4].mxu0 %v10738_v2 }
 0x1b5   :  { %9580 = vmatpush3.xpose.msra.mxu0 %v10750_v9  ;;  %9581 = vmatprep.mubr.msk.f32.mxu0 %vm10617_vm1, %v10616_v46  ;;  %v2835_v9 = vsel %vm560_vm2, %v2832_v3, 0 }
 0x1b6   :  { %9537 = vmatmul.mubr.f32.vlgmr.msra.gmra.mrb[2].mxu1 %v1087_v21  ;;  %9614 = vmatprep.subr.mxu0 %v10616_v46  ;;  %v10923_v13 = vand.u32 4294901760, %v2835_v9 }
 0x1b7   :  { %9540 = vmatpush3.xpose.msra.mxu1 %v10770_v20  ;;  %9541 = vmatprep.mubr.msk.f32.mxu1 %vm10617_vm1, %v10616_v46 }
 0x1b8   :  { %9544 = vmatprep.subr.mxu1 %v10616_v46  ;;  %v2906_v15 = vsub.f32 %v2835_v9, %v10923_v13 }
 0x1ba   :  { %v2907_v17 = vand.u32 4294901760, %v2906_v15 }
 0x1bc   :  { %9582 = vmatmul.mubr.f32.vlgmr.msra.gmra.mrb[4].mxu0 %v10738_v2  ;;  %v3372_v2 = vsub.f32 %v3292_v62, %v10896_v0  ;;  %v2908_v19 = vsub.f32 %v2906_v15, %v2907_v17 }
 0x1bd   :  { %9615 = vmatpush3.xpose.msra.mxu0 %v10813_v35  ;;  %9616 = vmatprep.mubr.msk.f32.mxu0 %vm10617_vm1, %v10616_v46 }
 0x1be   :  { %9542 = vmatmul.mubr.f32.vlgmr.msra.gmra.mrb[2].mxu1 %v1088_v23  ;;  %9619 = vmatprep.subr.mxu0 %v10616_v46  ;;  %v3373_v5 = vand.u32 4294901760, %v3372_v2  ;;  %v2909_v21 = vand.u32 4294901760, %v2908_v19  ;;  %v3742_v23 = vpop.permute.xlu1 %3741 }
 0x1bf   :  { %9545 = vmatpush3.xpose.msra.mxu1 %v1099_v24  ;;  %9546 = vmatprep.mubr.msk.f32.mxu1 %vm10617_vm1, %v10616_v46  ;;  %v3745_v25 = vsel %vm560_vm2, %v3742_v23, 0 }
 0x1c0   :  { %9617 = vmatmul.mubr.f32.vlgmr.msra.gmra.mrb[6].mxu0 %v2454_v44  ;;  %9549 = vmatprep.subr.mxu1 %v10616_v46  ;;  %v3374_v8 = vsub.f32 %v3372_v2, %v3373_v5  ;;  %v3815_v27 = vand.u32 4294901760, %v3745_v25 }
 0x1c1   :  { %9620 = vmatpush3.xpose.msra.mxu0 %v2465_v45  ;;  %9621 = vmatprep.mubr.msk.f32.mxu0 %vm10617_vm1, %v10616_v46 }
 0x1c2   :  { %9624 = vmatprep.subr.mxu0 %v10616_v46  ;;  %v3375_v12 = vand.u32 4294901760, %v3374_v8  ;;  %v3744_v24 = vpop.permute.xlu1 %3743  ;;  %v3816_v29 = vsub.f32 %v3745_v25, %v3815_v27 }
 0x1c3   :  { %v3747_v26 = vsel %vm560_vm2, %v3744_v24, 0 }
 0x1c4   :  { %v3750_v28 = vand.u32 4294901760, %v3747_v26  ;;  %v3817_v31 = vand.u32 4294901760, %v3816_v29 }
 0x1c6   :  { %9547 = vmatmul.mubr.f32.vlgmr.msra.gmra.mrb[2].mxu1 %v10767_v18  ;;  %v3827_v30 = vsub.f32 %v3747_v26, %v3750_v28  ;;  %v3818_v33 = vsub.f32 %v3816_v29, %v3817_v31 }
 0x1c7   :  { %9550 = vmatpush3.xpose.msra.mxu1 %v10770_v20  ;;  %9551 = vmatprep.mubr.msk.f32.mxu1 %vm10617_vm1, %v10616_v46 }
 0x1c8   :  { %9622 = vmatmul.mubr.f32.vlgmr.msra.gmra.mrb[6].mxu0 %v10811_v34  ;;  %9584 = vmatprep.subr.mxu1 %v10616_v46  ;;  %v3828_v32 = vand.u32 4294901760, %v3827_v30 }
 0x1c9   :  { %9625 = vmatpush3.xpose.msra.mxu0 %v10823_v37  ;;  %9626 = vmatprep.mubr.msk.f32.mxu0 %vm10617_vm1, %v10616_v46 }
 0x1ca   :  { %9629 = vmatprep.subr.mxu0 %v10616_v46 }
 0x1ce   :  { %9552 = vmatmul.mubr.f32.vlgmr.msra.gmra.mrb[2].mxu1 %v10767_v18  ;;  %v2918_v18 = vand.u32 4294901760, %v2917_v16 }
 0x1cf   :  { %9585 = vmatpush3.xpose.msra.mxu1 %v10850_v48  ;;  %9586 = vmatprep.mubr.msk.f32.mxu1 %vm10617_vm1, %v10616_v46 }
 0x1d0   :  { %9627 = vmatmul.mubr.f32.vlgmr.msra.gmra.mrb[6].mxu0 %v10820_v36  ;;  %9589 = vmatprep.subr.mxu1 %v10616_v46  ;;  %v2919_v20 = vsub.f32 %v2917_v16, %v2918_v18 }
 0x1d1   :  { %9630 = vmatpush3.xpose.msra.mxu0 %v10813_v35  ;;  %9631 = vmatprep.mubr.msk.f32.mxu0 %vm10617_vm1, %v10616_v46 }
 0x1d2   :  { %9587 = vmatmul.mubr.f32.vlgmr.msra.gmra.mrb[4].mxu1 %v2000_v58  ;;  %9634 = vmatprep.subr.mxu0 %v10616_v46  ;;  %v2920_v22 = vand.u32 4294901760, %v2919_v20 }
 0x1d3   :  { %9590 = vmatpush3.xpose.msra.mxu1 %v2011_v59  ;;  %9591 = vmatprep.mubr.msk.f32.mxu1 %vm10617_vm1, %v10616_v46 }
 0x1d4   :  { %9594 = vmatprep.subr.mxu1 %v10616_v46 }
 0x1d8   :  { %9632 = vmatmul.mubr.f32.vlgmr.msra.gmra.mrb[6].mxu0 %v2452_v38 }
 0x1d9   :  { %9635 = vmatpush3.xpose.msra.mxu0 %v2463_v39  ;;  %9636 = vmatprep.mubr.msk.f32.mxu0 %vm10617_vm1, %v10616_v46 }
 0x1da   :  { %9592 = vmatmul.mubr.f32.vlgmr.msra.gmra.mrb[4].mxu1 %v10847_v47  ;;  %9639 = vmatprep.subr.mxu0 %v10616_v46 }
 0x1db   :  { %9595 = vmatpush3.xpose.msra.mxu1 %v10859_v52  ;;  %9596 = vmatprep.mubr.msk.f32.mxu1 %vm10617_vm1, %v10616_v46 }
 0x1dc   :  { %9599 = vmatprep.subr.mxu1 %v10616_v46 }
 0x1e0   :  { %9637 = vmatmul.mubr.f32.vlgmr.msra.gmra.mrb[6].mxu0 %v10811_v34 }
 0x1e1   :  { %9640 = vmatpush3.xpose.msra.mxu0 %v10813_v35  ;;  %9641 = vmatprep.mubr.msk.f32.mxu0 %vm10617_vm1, %v10616_v46  ;;  %v3819_v35 = vand.u32 4294901760, %v3818_v33 }
 0x1e2   :  { %9597 = vmatmul.mubr.f32.vlgmr.msra.gmra.mrb[4].mxu1 %v10856_v49  ;;  %9674 = vmatprep.subr.mxu0 %v10616_v46 }
 0x1e3   :  { %9600 = vmatpush3.xpose.msra.mxu1 %v10850_v48  ;;  %9601 = vmatprep.mubr.msk.f32.mxu1 %vm10617_vm1, %v10616_v46 }
 0x1e4   :  { %9604 = vmatprep.subr.mxu1 %v10616_v46 }
 0x1e8   :  { %9642 = vmatmul.mubr.f32.vlgmr.msra.gmra.mrb[6].mxu0 %v10811_v34  ;;  %v3829_v34 = vsub.f32 %v3827_v30, %v3828_v32 }
 0x1e9   :  { %9675 = vmatpush3.xpose.msra.mxu0 %v10896_v0  ;;  %9676 = vmatprep.mubr.msk.f32.mxu0 %vm10617_vm1, %v10616_v46 }
 0x1ea   :  { %9602 = vmatmul.mubr.f32.vlgmr.msra.gmra.mrb[4].mxu1 %v1998_v53  ;;  %9679 = vmatprep.subr.mxu0 %v10616_v46  ;;  %v3830_v36 = vand.u32 4294901760, %v3829_v34 }
 0x1eb   :  { %9605 = vmatpush3.xpose.msra.mxu1 %v2009_v54  ;;  %9606 = vmatprep.mubr.msk.f32.mxu1 %vm10617_vm1, %v10616_v46 }
 0x1ec   :  { %9677 = vmatmul.mubr.f32.vlgmr.msra.gmra.mrb[8].mxu0 %v3364_v11  ;;  %9609 = vmatprep.subr.mxu1 %v10616_v46 }
 0x1ed   :  { %9680 = vmatpush3.xpose.msra.mxu0 %v3375_v12  ;;  %9681 = vmatprep.mubr.msk.f32.mxu0 %vm10617_vm1, %v10616_v46 }
 0x1ee   :  { %9684 = vmatprep.subr.mxu0 %v10616_v46 }
 0x1f2   :  { %9607 = vmatmul.mubr.f32.vlgmr.msra.gmra.mrb[4].mxu1 %v10847_v47 }
 0x1f3   :  { %9610 = vmatpush3.xpose.msra.mxu1 %v10850_v48  ;;  %9611 = vmatprep.mubr.msk.f32.mxu1 %vm10617_vm1, %v10616_v46 }
 0x1f4   :  { %9682 = vmatmul.mubr.f32.vlgmr.msra.gmra.mrb[8].mxu0 %v10892_v63  ;;  %9644 = vmatprep.subr.mxu1 %v10616_v46 }
 0x1f5   :  { %9685 = vmatpush3.xpose.msra.mxu0 %v3372_v2  ;;  %9686 = vmatprep.mubr.msk.f32.mxu0 %vm10617_vm1, %v10616_v46 }
 0x1f6   :  { %9689 = vmatprep.subr.mxu0 %v10616_v46 }
 0x1fa   :  { %9612 = vmatmul.mubr.f32.vlgmr.msra.gmra.mrb[4].mxu1 %v10847_v47 }
 0x1fb   :  { %9645 = vmatpush3.xpose.msra.mxu1 %v2840_v14  ;;  %9646 = vmatprep.mubr.msk.f32.mxu1 %vm10617_vm1, %v10616_v46 }
 0x1fc   :  { %9687 = vmatmul.mubr.f32.vlgmr.msra.gmra.mrb[8].mxu0 %v3361_v1  ;;  %9649 = vmatprep.subr.mxu1 %v10616_v46 }
 0x1fd   :  { %9690 = vmatpush3.xpose.msra.mxu0 %v10896_v0  ;;  %9691 = vmatprep.mubr.msk.f32.mxu0 %vm10617_vm1, %v10616_v46 }
 0x1fe   :  { %9647 = vmatmul.mubr.f32.vlgmr.msra.gmra.mrb[6].mxu1 %v2909_v21  ;;  %9694 = vmatprep.subr.mxu0 %v10616_v46 }
 0x1ff   :  { %9650 = vmatpush3.xpose.msra.mxu1 %v2920_v22  ;;  %9651 = vmatprep.mubr.msk.f32.mxu1 %vm10617_vm1, %v10616_v46 }
 0x200   :  { %9654 = vmatprep.subr.mxu1 %v10616_v46 }
 0x204   :  { %9692 = vmatmul.mubr.f32.vlgmr.msra.gmra.mrb[8].mxu0 %v3362_v4 }
 0x205   :  { %9695 = vmatpush3.xpose.msra.mxu0 %v3373_v5  ;;  %9696 = vmatprep.mubr.msk.f32.mxu0 %vm10617_vm1, %v10616_v46 }
 0x206   :  { %9652 = vmatmul.mubr.f32.vlgmr.msra.gmra.mrb[6].mxu1 %v10923_v13  ;;  %9699 = vmatprep.subr.mxu0 %v10616_v46 }
 0x207   :  { %9655 = vmatpush3.xpose.msra.mxu1 %v2917_v16  ;;  %9656 = vmatprep.mubr.msk.f32.mxu1 %vm10617_vm1, %v10616_v46 }
 0x208   :  { %9659 = vmatprep.subr.mxu1 %v10616_v46 }
 0x20c   :  { %9697 = vmatmul.mubr.f32.vlgmr.msra.gmra.mrb[8].mxu0 %v10892_v63 }
 0x20d   :  { %9700 = vmatpush3.xpose.msra.mxu0 %v10896_v0  ;;  %9701 = vmatprep.mubr.msk.f32.mxu0 %vm10617_vm1, %v10616_v46 }
 0x20e   :  { %9657 = vmatmul.mubr.f32.vlgmr.msra.gmra.mrb[6].mxu1 %v2906_v15  ;;  %9734 = vmatprep.subr.mxu0 %v10616_v46 }
 0x20f   :  { %9660 = vmatpush3.xpose.msra.mxu1 %v2840_v14  ;;  %9661 = vmatprep.mubr.msk.f32.mxu1 %vm10617_vm1, %v10616_v46 }
 0x210   :  { %9664 = vmatprep.subr.mxu1 %v10616_v46 }
 0x214   :  { %9702 = vmatmul.mubr.f32.vlgmr.msra.gmra.mrb[8].mxu0 %v10892_v63 }
 0x215   :  { %9736 = vmatprep.mubr.msk.f32.mxu0 %vm10617_vm1, %v10616_v46 }
 0x216   :  { %9662 = vmatmul.mubr.f32.vlgmr.msra.gmra.mrb[6].mxu1 %v2907_v17 }
 0x217   :  { %9665 = vmatpush3.xpose.msra.mxu1 %v2918_v18  ;;  %9666 = vmatprep.mubr.msk.f32.mxu1 %vm10617_vm1, %v10616_v46 }
 0x218   :  { %9669 = vmatprep.subr.mxu1 %v10616_v46 }
 0x21e   :  { %9667 = vmatmul.mubr.f32.vlgmr.msra.gmra.mrb[6].mxu1 %v10923_v13 }
 0x21f   :  { %9670 = vmatpush3.xpose.msra.mxu1 %v2840_v14  ;;  %9671 = vmatprep.mubr.msk.f32.mxu1 %vm10617_vm1, %v10616_v46 }
 0x220   :  { %9704 = vmatprep.subr.mxu1 %v10616_v46 }
 0x226   :  { %9672 = vmatmul.mubr.f32.vlgmr.msra.gmra.mrb[6].mxu1 %v10923_v13 }
 0x227   :  { %9705 = vmatpush3.xpose.msra.mxu1 %v3750_v28  ;;  %9706 = vmatprep.mubr.msk.f32.mxu1 %vm10617_vm1, %v10616_v46 }
 0x228   :  { %9709 = vmatprep.subr.mxu1 %v10616_v46 }
 0x22a   :  { %9707 = vmatmul.mubr.f32.vlgmr.msra.gmra.mrb[8].mxu1 %v3819_v35 }
 0x22b   :  { %9710 = vmatpush3.xpose.msra.mxu1 %v3830_v36  ;;  %9711 = vmatprep.mubr.msk.f32.mxu1 %vm10617_vm1, %v10616_v46 }
 0x22c   :  { %9714 = vmatprep.subr.mxu1 %v10616_v46 }
 0x232   :  { %9712 = vmatmul.mubr.f32.vlgmr.msra.gmra.mrb[8].mxu1 %v3815_v27 }
 0x233   :  { %9715 = vmatpush3.xpose.msra.mxu1 %v3827_v30  ;;  %9716 = vmatprep.mubr.msk.f32.mxu1 %vm10617_vm1, %v10616_v46 }
 0x234   :  { %9719 = vmatprep.subr.mxu1 %v10616_v46 }
 0x23a   :  { %9717 = vmatmul.mubr.f32.vlgmr.msra.gmra.mrb[8].mxu1 %v3816_v29 }
 0x23b   :  { %9720 = vmatpush3.xpose.msra.mxu1 %v3750_v28  ;;  %9721 = vmatprep.mubr.msk.f32.mxu1 %vm10617_vm1, %v10616_v46 }
 0x23c   :  { %9724 = vmatprep.subr.mxu1 %v10616_v46 }
 0x242   :  { %9722 = vmatmul.mubr.f32.vlgmr.msra.gmra.mrb[8].mxu1 %v3817_v31 }
 0x243   :  { %9725 = vmatpush3.xpose.msra.mxu1 %v3828_v32  ;;  %9726 = vmatprep.mubr.msk.f32.mxu1 %vm10617_vm1, %v10616_v46 }
 0x244   :  { %9729 = vmatprep.subr.mxu1 %v10616_v46 }
 0x24a   :  { %9727 = vmatmul.mubr.f32.vlgmr.msra.gmra.mrb[8].mxu1 %v3815_v27 }
 0x24b   :  { %9730 = vmatpush3.xpose.msra.mxu1 %v3750_v28  ;;  %9731 = vmatprep.mubr.msk.f32.mxu1 %vm10617_vm1, %v10616_v46 }
 0x24c   :  { %9764 = vmatprep.subr.mxu1 %v10616_v46 }
 0x252   :  { %9732 = vmatmul.mubr.f32.vlgmr.msra.gmra.mrb[8].mxu1 %v3815_v27 }
 0x253   :  { %9766 = vmatprep.mubr.msk.f32.mxu1 %vm10617_vm1, %v10616_v46 }
 0x263   :  { %v713_v37 = vpop.f32.mrb[2].mxu0 }
 0x264   :  { %v9503_v38 = vpop.f32.mrb[3].mxu0 }
 0x275   :  { %v1007_v39 = vpop.f32.mrb[0].mxu1 }
 0x276   :  { %v10348_v40 = vadd.f32 %v1007_v39, %v713_v37  ;;  %v9523_v41 = vpop.f32.mrb[1].mxu1 }
 0x278   :  { %1011 = vst.msk [vmem:[#allocation2] sm:$0xff] %vm560_vm2, %v10348_v40 }
 0x27f   :  { %v4196_v42 = vld [vmem:[#allocation2] sm:$0xff] }
 0x280   :  { %v4204_v43 = vsel %vm560_vm2, %v4196_v42, -inf }
 0x281   :  { %4205 = vmax.xlane.f32.xlu0 %v4204_v43 }
 0x28f   :  { %v1917_v44 = vpop.f32.mrb[4].mxu0 }
 0x290   :  { %1921 = vst.msk [vmem:[#allocation2 + $0x10] sm:$0xff] %vm560_vm2, %v1917_v44  ;;  %v9583_v45 = vpop.f32.mrb[5].mxu0 }
 0x297   :  { %v11001_v47 = vld [vmem:[#allocation2 + $0x10] sm:$0xff] }
 0x298   :  { %v4210_v48 = vsel %vm560_vm2, %v11001_v47, -inf }
 0x299   :  { %4211 = vmax.xlane.f32.xlu0 %v4210_v48 }
 0x2a1   :  { %v1462_v49 = vpop.f32.mrb[2].mxu1 }
 0x2a2   :  { %1466 = vst.msk [vmem:[#allocation2 + $0x8] sm:$0xff] %vm560_vm2, %v1462_v49  ;;  %v9553_v52 = vpop.f32.mrb[3].mxu1 }
 0x2a9   :  { %v4197_v53 = vld [vmem:[#allocation2 + $0x8] sm:$0xff] }
 0x2aa   :  { %v4207_v54 = vsel %vm560_vm2, %v4197_v53, -inf }
 0x2ab   :  { %4208 = vmax.xlane.f32.xlu1 %v4207_v54 }
 0x2bb   :  { %v2826_v55 = vpop.f32.mrb[6].mxu0 }
 0x2bc   :  { %2830 = vst.msk [vmem:[#allocation2 + $0x20] sm:$0xff] %vm560_vm2, %v2826_v55  ;;  %v9643_v56 = vpop.f32.mrb[7].mxu0 }
 0x2c3   :  { %v4200_v57 = vld [vmem:[#allocation2 + $0x20] sm:$0xff] }
 0x2c4   :  { %v4216_v58 = vsel %vm560_vm2, %v4200_v57, -inf }
 0x2c5   :  { %4217 = vmax.xlane.f32.xlu1 %v4216_v58 }
 0x2cd   :  { %v2372_v59 = vpop.f32.mrb[4].mxu1 }
 0x2ce   :  { %2376 = vst.msk [vmem:[#allocation2 + $0x18] sm:$0xff] %vm560_vm2, %v2372_v59  ;;  %v9613_v60 = vpop.f32.mrb[5].mxu1 }
 0x2d5   :  { %v4199_v61 = vld [vmem:[#allocation2 + $0x18] sm:$0xff] }
 0x2d6   :  { %v4213_v62 = vsel %vm560_vm2, %v4199_v61, -inf }
 0x2d7   :  { %4214 = vmax.xlane.f32.xlu0 %v4213_v62 }
 0x2e7   :  { %v3736_v63 = vpop.f32.mrb[8].mxu0 }
 0x2e8   :  { %3740 = vst.msk [vmem:[#allocation2 + $0x30] sm:$0xff] %vm560_vm2, %v3736_v63  ;;  %v9703_v0 = vpop.f32.mrb[9].mxu0 }
 0x2ef   :  { %v11018_v12 = vld [vmem:[#allocation2 + $0x30] sm:$0xff] }
 0x2f0   :  { %v4222_v13 = vsel %vm560_vm2, %v11018_v12, -inf }
 0x2f9   :  { %v3281_v1 = vpop.f32.mrb[6].mxu1 }
 0x2fa   :  { %3285 = vst.msk [vmem:[#allocation2 + $0x28] sm:$0xff] %vm560_vm2, %v3281_v1  ;;  %v9673_v2 = vpop.f32.mrb[7].mxu1 }
 0x301   :  { %v4201_v3 = vld [vmem:[#allocation2 + $0x28] sm:$0xff] }
 0x302   :  { %v4219_v4 = vsel %vm560_vm2, %v4201_v3, -inf }
 0x303   :  { %4220 = vmax.xlane.f32.xlu1 %v4219_v4 }
 0x30e   :  { %v4206_v5 = vpop.xlane.xlu0 %4205 }
 0x30f   :  { %v4228_v6 = vsub.f32 %v4196_v42, %v4206_v5 }
 0x311   :  { %v4236_v7 = vmul.f32 1.442695, %v4228_v6 }
 0x313   :  { %10560 = vpow2.f32 %v4236_v7 }
 0x314   :  { %4292 = vrot.lane.b32.xlu1 %v10712_v50, %s10625_s5 }
 0x31d   :  { %v10561_v8 = vpop.eup %10560 }
 0x31e   :  { %v4252_v9 = vsel %vm560_vm2, %v10561_v8, 0.0 }
 0x31f   :  { %4253 = vadd.xlane.f32.xlu0 %v4252_v9 }
 0x325   :  { %v4191_v10 = vpop.f32.mrb[8].mxu1 }
 0x326   :  { %4195 = vst.msk [vmem:[#allocation2 + $0x38] sm:$0xff] %vm560_vm2, %v4191_v10  ;;  %v9733_v11 = vpop.f32.mrb[9].mxu1  ;;  %v4212_v24 = vpop.xlane.xlu0 %4211 }
 0x327   :  { %v4230_v25 = vsub.f32 %v11001_v47, %v4212_v24 }
 0x329   :  { %v4240_v27 = vmul.f32 1.442695, %v4230_v25 }
 0x32d   :  { %v11022_v15 = vld [vmem:[#allocation2 + $0x38] sm:$0xff] }
 0x32e   :  { %v4225_v18 = vsel %vm560_vm2, %v11022_v15, -inf }
 0x338   :  { %v4209_v14 = vpop.xlane.xlu1 %4208  ;;  %4223 = vmax.xlane.f32.xlu1 %v4222_v13 }
 0x339   :  { %v4229_v16 = vsub.f32 %v4197_v53, %v4209_v14 }
 0x33b   :  { %v4238_v17 = vmul.f32 1.442695, %v4229_v16 }
 0x33c   :  { %4226 = vmax.xlane.f32.xlu1 %v4225_v18 }
 0x33d   :  { %10562 = vpow2.f32 %v4238_v17 }
 0x347   :  { %v11026_v19 = vpop.eup %10562 }
 0x348   :  { %v4255_v20 = vsel %vm560_vm2, %v11026_v19, 0.0 }
 0x349   :  { %4256 = vadd.xlane.f32.xlu0 %v4255_v20 }
 0x34d   :  { %5203 = vrot.lane.b32.xlu1 %v10712_v50, %s10626_s6 }
 0x352   :  { %v4218_v21 = vpop.xlane.xlu1 %4217 }
 0x353   :  { %v4232_v22 = vsub.f32 %v4200_v57, %v4218_v21 }
 0x355   :  { %v4244_v23 = vmul.f32 1.442695, %v4232_v22 }
 0x357   :  { %10564 = vpow2.f32 %v4244_v23 }
 0x358   :  { %10566 = vpow2.f32 %v4240_v27 }
 0x35f   :  { %4745 = vrot.lane.b32.xlu0 %v10712_v50, %s10627_s7 }
 0x361   :  { %v11035_v29 = vpop.eup %10564 }
 0x362   :  { %v4264_v31 = vsel %vm560_vm2, %v11035_v29, 0.0  ;;  %v11039_v32 = vpop.eup %10566 }
 0x363   :  { %v4258_v33 = vsel %vm560_vm2, %v11039_v32, 0.0 }
 0x364   :  { %v4215_v26 = vpop.xlane.xlu0 %4214 }
 0x365   :  { %v4231_v28 = vsub.f32 %v4199_v61, %v4215_v26 }
 0x367   :  { %v4242_v30 = vmul.f32 1.442695, %v4231_v28 }
 0x369   :  { %10568 = vpow2.f32 %v4242_v30 }
 0x371   :  { %4265 = vadd.xlane.f32.xlu1 %v4264_v31 }
 0x373   :  { %v11043_v34 = vpop.eup %10568 }
 0x374   :  { %v4261_v35 = vsel %vm560_vm2, %v11043_v34, 0.0 }
 0x37e   :  { %4259 = vadd.xlane.f32.xlu0 %v4258_v33 }
 0x382   :  { %4262 = vadd.xlane.f32.xlu0 %v4261_v35  ;;  %6119 = vrot.lane.b32.xlu1 %v10720_v51, %s10625_s5 }
 0x390   :  { %v4221_v36 = vpop.xlane.xlu1 %4220 }
 0x391   :  { %v4233_v39 = vsub.f32 %v4201_v3, %v4221_v36 }
 0x393   :  { %v4246_v40 = vmul.f32 1.442695, %v4233_v39 }
 0x394   :  { %v4293_v37 = vpop.permute.xlu1 %4292 }
 0x395   :  { %v11049_v38 = vand.u32 4294901760, %v4293_v37  ;;  %10570 = vpow2.f32 %v4246_v40 }
 0x397   :  { %9735 = vmatpush3.msra.mxu0 %v11049_v38  ;;  %v4376_v45 = vsub.f32 %v4293_v37, %v11049_v38 }
 0x398   :  { %5661 = vrot.lane.b32.xlu0 %v10712_v50, %s10628_s8  ;;  %9739 = vmatprep.subr.mxu0 %v10616_v46 }
 0x399   :  { %v4377_v49 = vand.u32 4294901760, %v4376_v45 }
 0x39b   :  { %v4378_v54 = vsub.f32 %v4376_v45, %v4377_v49 }
 0x39d   :  { %v4379_v57 = vand.u32 4294901760, %v4378_v54 }
 0x39f   :  { %v11055_v42 = vpop.eup %10570 }
 0x3a0   :  { %v4267_v43 = vsel %vm560_vm2, %v11055_v42, 0.0 }
 0x3ac   :  { %v4254_v41 = vpop.xlane.xlu0 %4253 }
 0x3ad   :  { %10572 = vrcp.f32 %v4254_v41 }
 0x3b7   :  { %v10573_v44 = vpop.eup %10572  ;;  %4268 = vadd.xlane.f32.xlu0 %v4267_v43 }
 0x3b8   :  { %v4277_v47 = vmul.f32 %v10573_v44, %v10561_v8 }
 0x3ba   :  { %v4296_v48 = vsel %vm560_vm2, %v4277_v47, 0 }
 0x3bb   :  { %v4364_v50 = vand.u32 4294901760, %v4296_v48 }
 0x3bd   :  { %v4365_v52 = vsub.f32 %v4296_v48, %v4364_v50 }
 0x3bf   :  { %v4366_v53 = vand.u32 4294901760, %v4365_v52 }
 0x3c1   :  { %v4367_v55 = vsub.f32 %v4365_v52, %v4366_v53 }
 0x3c3   :  { %v4368_v56 = vand.u32 4294901760, %v4367_v55 }
 0x3c5   :  { %9737 = vmatmul.mubr.f32.vlgmr.msra.gmra.mrb[10].mxu0 %v4368_v56  ;;  %v4224_v58 = vpop.xlane.xlu1 %4223 }
 0x3c6   :  { %9740 = vmatpush3.msra.mxu0 %v4379_v57  ;;  %v4234_v59 = vsub.f32 %v11018_v12, %v4224_v58  ;;  %9741 = vmatprep.mubr.msk.f32.mxu0 %vm10617_vm1, %v10616_v46 }
 0x3c7   :  { %9744 = vmatprep.subr.mxu0 %v10616_v46 }
 0x3c8   :  { %v4248_v60 = vmul.f32 1.442695, %v4234_v59 }
 0x3c9   :  { %v4227_v61 = vpop.xlane.xlu1 %4226 }
 0x3ca   :  { %10574 = vpow2.f32 %v4248_v60  ;;  %v4235_v0 = vsub.f32 %v11022_v15, %v4227_v61 }
 0x3cc   :  { %v4250_v2 = vmul.f32 1.442695, %v4235_v0 }
 0x3cd   :  { %6572 = vrot.lane.b32.xlu0 %v10720_v51, %s10627_s7  ;;  %9742 = vmatmul.mubr.f32.vlgmr.msra.gmra.mrb[10].mxu0 %v4364_v50  ;;  %v5204_v13 = vpop.permute.xlu1 %5203 }
 0x3ce   :  { %9745 = vmatpush3.msra.mxu0 %v4376_v45  ;;  %9746 = vmatprep.mubr.msk.f32.mxu0 %vm10617_vm1, %v10616_v46  ;;  %v11095_v18 = vand.u32 4294901760, %v5204_v13 }
 0x3cf   :  { %9749 = vmatprep.subr.mxu0 %v10616_v46 }
 0x3d0   :  { %v5287_v25 = vsub.f32 %v5204_v13, %v11095_v18 }
 0x3d2   :  { %v5288_v31 = vand.u32 4294901760, %v5287_v25 }
 0x3d4   :  { %v11070_v62 = vpop.eup %10574  ;;  %v5289_v39 = vsub.f32 %v5287_v25, %v5288_v31 }
 0x3d5   :  { %9747 = vmatmul.mubr.f32.vlgmr.msra.gmra.mrb[10].mxu0 %v4365_v52  ;;  %v4270_v63 = vsel %vm560_vm2, %v11070_v62, 0.0 }
 0x3d6   :  { %9750 = vmatpush3.msra.mxu0 %v11049_v38  ;;  %v4257_v1 = vpop.xlane.xlu0 %4256  ;;  %4271 = vadd.xlane.f32.xlu1 %v4270_v63  ;;  %v5290_v47 = vand.u32 4294901760, %v5289_v39 }
 0x3d7   :  { %10576 = vrcp.f32 %v4257_v1  ;;  %9751 = vmatprep.mubr.msk.f32.mxu0 %vm10617_vm1, %v10616_v46  ;;  %9754 = vmatprep.subr.mxu0 %v10616_v46 }
 0x3d8   :  { %10578 = vpow2.f32 %v4250_v2 }
 0x3da   :  { %v4746_v3 = vpop.permute.xlu0 %4745 }
 0x3db   :  { %v4752_v4 = vand.u32 4294901760, %v4746_v3 }
 0x3dd   :  { %9752 = vmatmul.mubr.f32.vlgmr.msra.gmra.mrb[10].mxu0 %v4366_v53  ;;  %9765 = vmatpush3.msra.mxu1 %v4752_v4  ;;  %v4829_v7 = vsub.f32 %v4746_v3, %v4752_v4 }
 0x3de   :  { %9755 = vmatpush3.msra.mxu0 %v4377_v49  ;;  %9756 = vmatprep.mubr.msk.f32.mxu0 %vm10617_vm1, %v10616_v46 }
 0x3df   :  { %9759 = vmatprep.subr.mxu0 %v10616_v46  ;;  %9769 = vmatprep.subr.mxu1 %v10616_v46  ;;  %v4830_v10 = vand.u32 4294901760, %v4829_v7 }
 0x3e1   :  { %v10577_v5 = vpop.eup %10576  ;;  %v4831_v15 = vsub.f32 %v4829_v7, %v4830_v10 }
 0x3e2   :  { %v4279_v6 = vmul.f32 %v10577_v5, %v11026_v19  ;;  %v11091_v12 = vpop.eup %10578 }
 0x3e3   :  { %v4273_v16 = vsel %vm560_vm2, %v11091_v12, 0.0  ;;  %v4832_v20 = vand.u32 4294901760, %v4831_v15 }
 0x3e4   :  { %v4749_v8 = vsel %vm560_vm2, %v4279_v6, 0 }
 0x3e5   :  { %9757 = vmatmul.mubr.f32.vlgmr.msra.gmra.mrb[10].mxu0 %v4364_v50  ;;  %v4817_v9 = vand.u32 4294901760, %v4749_v8 }
 0x3e6   :  { %9760 = vmatpush3.msra.mxu0 %v11049_v38  ;;  %9761 = vmatprep.mubr.msk.f32.mxu0 %vm10617_vm1, %v10616_v46 }
 0x3e7   :  { %7029 = vrot.lane.b32.xlu1 %v10720_v51, %s10626_s6  ;;  %9794 = vmatprep.subr.mxu0 %v10616_v46  ;;  %v4818_v11 = vsub.f32 %v4749_v8, %v4817_v9 }
 0x3e9   :  { %v4819_v14 = vand.u32 4294901760, %v4818_v11 }
 0x3eb   :  { %v4820_v17 = vsub.f32 %v4818_v11, %v4819_v14 }
 0x3ec   :  { %4274 = vadd.xlane.f32.xlu0 %v4273_v16 }
 0x3ed   :  { %9762 = vmatmul.mubr.f32.vlgmr.msra.gmra.mrb[10].mxu0 %v4364_v50  ;;  %v4821_v19 = vand.u32 4294901760, %v4820_v17 }
 0x3ee   :  { %9795 = vmatpush3.msra.mxu0 %v11095_v18  ;;  %9796 = vmatprep.mubr.msk.f32.mxu0 %vm10617_vm1, %v10616_v46 }
 0x3ef   :  { %9767 = vmatmul.mubr.f32.vlgmr.msra.gmra.mrb[10].mxu1 %v4821_v19  ;;  %9799 = vmatprep.subr.mxu0 %v10616_v46 }
 0x3f0   :  { %9770 = vmatpush3.msra.mxu1 %v4832_v20  ;;  %9771 = vmatprep.mubr.msk.f32.mxu1 %vm10617_vm1, %v10616_v46 }
 0x3f1   :  { %9774 = vmatprep.subr.mxu1 %v10616_v46 }
 0x3f7   :  { %9772 = vmatmul.mubr.f32.vlgmr.msra.gmra.mrb[10].mxu1 %v4817_v9 }
 0x3f8   :  { %9775 = vmatpush3.msra.mxu1 %v4829_v7  ;;  %9776 = vmatprep.mubr.msk.f32.mxu1 %vm10617_vm1, %v10616_v46 }
 0x3f9   :  { %9779 = vmatprep.subr.mxu1 %v10616_v46 }
 0x3fe   :  { %v4266_v49 = vpop.xlane.xlu1 %4265 }
 0x3ff   :  { %9777 = vmatmul.mubr.f32.vlgmr.msra.gmra.mrb[10].mxu1 %v4818_v11 }
 0x400   :  { %9780 = vmatpush3.msra.mxu1 %v4752_v4  ;;  %9781 = vmatprep.mubr.msk.f32.mxu1 %vm10617_vm1, %v10616_v46 }
 0x401   :  { %9784 = vmatprep.subr.mxu1 %v10616_v46 }
 0x402   :  { %7486 = vrot.lane.b32.xlu0 %v10720_v51, %s10628_s8  ;;  %v6120_v56 = vpop.permute.xlu1 %6119 }
 0x407   :  { %9782 = vmatmul.mubr.f32.vlgmr.msra.gmra.mrb[10].mxu1 %v4819_v14 }
 0x408   :  { %9785 = vmatpush3.msra.mxu1 %v4830_v10  ;;  %9786 = vmatprep.mubr.msk.f32.mxu1 %vm10617_vm1, %v10616_v46 }
 0x409   :  { %9789 = vmatprep.subr.mxu1 %v10616_v46 }
 0x40b   :  { %v4260_v21 = vpop.xlane.xlu0 %4259 }
 0x40c   :  { %10580 = vrcp.f32 %v4260_v21 }
 0x40f   :  { %9787 = vmatmul.mubr.f32.vlgmr.msra.gmra.mrb[10].mxu1 %v4817_v9  ;;  %v4263_v22 = vpop.xlane.xlu0 %4262 }
 0x410   :  { %9790 = vmatpush3.msra.mxu1 %v4752_v4  ;;  %10582 = vrcp.f32 %v4263_v22  ;;  %9791 = vmatprep.mubr.msk.f32.mxu1 %vm10617_vm1, %v10616_v46 }
 0x411   :  { %9824 = vmatprep.subr.mxu1 %v10616_v46  ;;  %10584 = vrcp.f32 %v4266_v49 }
 0x413   :  { %v5662_v23 = vpop.permute.xlu0 %5661 }
 0x414   :  { %v11118_v51 = vand.u32 4294901760, %v5662_v23 }
 0x416   :  { %v10581_v24 = vpop.eup %10580  ;;  %v5745_v35 = vsub.f32 %v5662_v23, %v11118_v51 }
 0x417   :  { %v4281_v26 = vmul.f32 %v10581_v24, %v11039_v32  ;;  %9792 = vmatmul.mubr.f32.vlgmr.msra.gmra.mrb[10].mxu1 %v4817_v9 }
 0x418   :  { %9825 = vmatpush3.msra.mxu1 %v11118_v51  ;;  %9826 = vmatprep.mubr.msk.f32.mxu1 %vm10617_vm1, %v10616_v46  ;;  %v5746_v40 = vand.u32 4294901760, %v5745_v35 }
 0x419   :  { %v5207_v27 = vsel %vm560_vm2, %v4281_v26, 0  ;;  %9829 = vmatprep.subr.mxu1 %v10616_v46 }
 0x41a   :  { %v10583_v28 = vpop.eup %10582  ;;  %v11127_v30 = vand.u32 4294901760, %v5207_v27  ;;  %v5747_v48 = vsub.f32 %v5745_v35, %v5746_v40 }
 0x41b   :  { %v4283_v33 = vmul.f32 %v10583_v28, %v11043_v34  ;;  %v10585_v53 = vpop.eup %10584 }
 0x41c   :  { %v5276_v32 = vsub.f32 %v5207_v27, %v11127_v30  ;;  %v5748_v52 = vand.u32 4294901760, %v5747_v48  ;;  %v4285_v54 = vmul.f32 %v10585_v53, %v11035_v29  ;;  %v11165_v29 = vand.u32 4294901760, %v6120_v56 }
 0x41d   :  { %v5665_v36 = vsel %vm560_vm2, %v4283_v33, 0 }
 0x41e   :  { %v5277_v37 = vand.u32 4294901760, %v5276_v32  ;;  %v11133_v38 = vand.u32 4294901760, %v5665_v36  ;;  %v6123_v55 = vsel %vm560_vm2, %v4285_v54, 0  ;;  %v11174_v59 = vsub.f32 %v6120_v56, %v11165_v29 }
 0x41f   :  { %v11163_v57 = vand.u32 4294901760, %v6123_v55 }
 0x420   :  { %v5278_v41 = vsub.f32 %v5276_v32, %v5277_v37  ;;  %v5734_v43 = vsub.f32 %v5665_v36, %v11133_v38  ;;  %v6204_v63 = vand.u32 4294901760, %v11174_v59 }
 0x421   :  { %v11171_v58 = vsub.f32 %v6123_v55, %v11163_v57 }
 0x422   :  { %v5279_v44 = vand.u32 4294901760, %v5278_v41  ;;  %v5735_v45 = vand.u32 4294901760, %v5734_v43  ;;  %v6205_v2 = vsub.f32 %v11174_v59, %v6204_v63 }
 0x423   :  { %v6193_v61 = vand.u32 4294901760, %v11171_v58 }
 0x424   :  { %9797 = vmatmul.mubr.f32.vlgmr.msra.gmra.mrb[12].mxu0 %v5279_v44  ;;  %v5736_v34 = vsub.f32 %v5734_v43, %v5735_v45  ;;  %v6206_v6 = vand.u32 4294901760, %v6205_v2 }
 0x425   :  { %9800 = vmatpush3.msra.mxu0 %v5290_v47  ;;  %9801 = vmatprep.mubr.msk.f32.mxu0 %vm10617_vm1, %v10616_v46  ;;  %v6194_v1 = vsub.f32 %v11171_v58, %v6193_v61 }
 0x426   :  { %v5737_v50 = vand.u32 4294901760, %v5736_v34  ;;  %9804 = vmatprep.subr.mxu0 %v10616_v46 }
 0x427   :  { %v6195_v4 = vand.u32 4294901760, %v6194_v1  ;;  %v7947_v1 = vld [vmem:[%s11496_s1 + $0x28] sm:$0xff] }
 0x428   :  { %9827 = vmatmul.mubr.f32.vlgmr.msra.gmra.mrb[12].mxu1 %v5737_v50 }
 0x429   :  { %9830 = vmatpush3.msra.mxu1 %v5748_v52  ;;  %9831 = vmatprep.mubr.msk.f32.mxu1 %vm10617_vm1, %v10616_v46 }
 0x42a   :  { %9834 = vmatprep.subr.mxu1 %v10616_v46 }
 0x42c   :  { %9802 = vmatmul.mubr.f32.vlgmr.msra.gmra.mrb[12].mxu0 %v11127_v30 }
 0x42d   :  { %9805 = vmatpush3.msra.mxu0 %v5287_v25  ;;  %9806 = vmatprep.mubr.msk.f32.mxu0 %vm10617_vm1, %v10616_v46 }
 0x42e   :  { %9809 = vmatprep.subr.mxu0 %v10616_v46 }
 0x430   :  { %9832 = vmatmul.mubr.f32.vlgmr.msra.gmra.mrb[12].mxu1 %v11133_v38 }
 0x431   :  { %9835 = vmatpush3.msra.mxu1 %v5745_v35  ;;  %9836 = vmatprep.mubr.msk.f32.mxu1 %vm10617_vm1, %v10616_v46 }
 0x432   :  { %9839 = vmatprep.subr.mxu1 %v10616_v46 }
 0x434   :  { %9807 = vmatmul.mubr.f32.vlgmr.msra.gmra.mrb[12].mxu0 %v5276_v32 }
 0x435   :  { %9810 = vmatpush3.msra.mxu0 %v11095_v18  ;;  %9811 = vmatprep.mubr.msk.f32.mxu0 %vm10617_vm1, %v10616_v46 }
 0x436   :  { %9814 = vmatprep.subr.mxu0 %v10616_v46 }
 0x438   :  { %9837 = vmatmul.mubr.f32.vlgmr.msra.gmra.mrb[12].mxu1 %v5734_v43 }
 0x439   :  { %9840 = vmatpush3.msra.mxu1 %v11118_v51  ;;  %9841 = vmatprep.mubr.msk.f32.mxu1 %vm10617_vm1, %v10616_v46 }
 0x43a   :  { %9844 = vmatprep.subr.mxu1 %v10616_v46 }
 0x43c   :  { %9812 = vmatmul.mubr.f32.vlgmr.msra.gmra.mrb[12].mxu0 %v5277_v37 }
 0x43d   :  { %9815 = vmatpush3.msra.mxu0 %v5288_v31  ;;  %9816 = vmatprep.mubr.msk.f32.mxu0 %vm10617_vm1, %v10616_v46 }
 0x43e   :  { %9819 = vmatprep.subr.mxu0 %v10616_v46 }
 0x440   :  { %9842 = vmatmul.mubr.f32.vlgmr.msra.gmra.mrb[12].mxu1 %v5735_v45 }
 0x441   :  { %9845 = vmatpush3.msra.mxu1 %v5746_v40  ;;  %9846 = vmatprep.mubr.msk.f32.mxu1 %vm10617_vm1, %v10616_v46 }
 0x442   :  { %9849 = vmatprep.subr.mxu1 %v10616_v46 }
 0x444   :  { %v4269_v60 = vpop.xlane.xlu0 %4268  ;;  %9817 = vmatmul.mubr.f32.vlgmr.msra.gmra.mrb[12].mxu0 %v11127_v30 }
 0x445   :  { %10586 = vrcp.f32 %v4269_v60  ;;  %9820 = vmatpush3.msra.mxu0 %v11095_v18  ;;  %9821 = vmatprep.mubr.msk.f32.mxu0 %vm10617_vm1, %v10616_v46 }
 0x446   :  { %9854 = vmatprep.subr.mxu0 %v10616_v46 }
 0x448   :  { %9847 = vmatmul.mubr.f32.vlgmr.msra.gmra.mrb[12].mxu1 %v11133_v38  ;;  %v6573_v0 = vpop.permute.xlu0 %6572 }
 0x449   :  { %9850 = vmatpush3.msra.mxu1 %v11118_v51  ;;  %9851 = vmatprep.mubr.msk.f32.mxu1 %vm10617_vm1, %v10616_v46  ;;  %v11190_v3 = vand.u32 4294901760, %v6573_v0 }
 0x44a   :  { %9884 = vmatprep.subr.mxu1 %v10616_v46 }
 0x44b   :  { %v6656_v8 = vsub.f32 %v6573_v0, %v11190_v3  ;;  %v7946_v0 = vld [vmem:[%s11496_s1 + $0x18] sm:$0xff] }
 0x44c   :  { %9822 = vmatmul.mubr.f32.vlgmr.msra.gmra.mrb[12].mxu0 %v11127_v30 }
 0x44d   :  { %9855 = vmatpush3.msra.mxu0 %v11165_v29  ;;  %9856 = vmatprep.mubr.msk.f32.mxu0 %vm10617_vm1, %v10616_v46  ;;  %v6657_v10 = vand.u32 4294901760, %v6656_v8 }
 0x44e   :  { %9859 = vmatprep.subr.mxu0 %v10616_v46 }
 0x44f   :  { %v10587_v5 = vpop.eup %10586  ;;  %v6658_v14 = vsub.f32 %v6656_v8, %v6657_v10 }
 0x450   :  { %v4287_v7 = vmul.f32 %v10587_v5, %v11055_v42  ;;  %9852 = vmatmul.mubr.f32.vlgmr.msra.gmra.mrb[12].mxu1 %v11133_v38  ;;  %9857 = vmatmul.mubr.f32.vlgmr.msra.gmra.mrb[14].mxu0 %v6195_v4  ;;  %v7948_v4 = vld [vmem:[%s11496_s1 + $0x38] sm:$0xff]  ;;  %v7963_v5 = vand.u32 4294901760, %v7947_v1 }
 0x451   :  { %9860 = vmatpush3.msra.mxu0 %v6206_v6  ;;  %9885 = vmatpush3.msra.mxu1 %v11190_v3  ;;  %v6659_v17 = vand.u32 4294901760, %v6658_v14  ;;  %v7966_v6 = vand.u32 4294901760, %v7948_v4 }
 0x452   :  { %9861 = vmatprep.mubr.msk.f32.mxu0 %vm10617_vm1, %v10616_v46  ;;  %9864 = vmatprep.subr.mxu0 %v10616_v46  ;;  %v6576_v9 = vsel %vm560_vm2, %v4287_v7, 0 }
 0x453   :  { %9886 = vmatprep.mubr.msk.f32.mxu1 %vm10617_vm1, %v10616_v46  ;;  %9889 = vmatprep.subr.mxu1 %v10616_v46  ;;  %v11208_v42 = vand.u32 4294901760, %v6576_v9 }
 0x455   :  { %v6645_v11 = vsub.f32 %v6576_v9, %v11208_v42 }
 0x457   :  { %v6646_v13 = vand.u32 4294901760, %v6645_v11 }
 0x458   :  { %9862 = vmatmul.mubr.f32.vlgmr.msra.gmra.mrb[14].mxu0 %v11163_v57 }
 0x459   :  { %9865 = vmatpush3.msra.mxu0 %v11174_v59  ;;  %v6647_v15 = vsub.f32 %v6645_v11, %v6646_v13  ;;  %9866 = vmatprep.mubr.msk.f32.mxu0 %vm10617_vm1, %v10616_v46 }
 0x45a   :  { %9869 = vmatprep.subr.mxu0 %v10616_v46 }
 0x45b   :  { %v6648_v16 = vand.u32 4294901760, %v6647_v15 }
 0x45d   :  { %9887 = vmatmul.mubr.f32.vlgmr.msra.gmra.mrb[14].mxu1 %v6648_v16 }
 0x45e   :  { %9890 = vmatpush3.msra.mxu1 %v6659_v17  ;;  %9891 = vmatprep.mubr.msk.f32.mxu1 %vm10617_vm1, %v10616_v46  ;;  %v8061_v17 = vsub.f32 %v7947_v1, %v7963_v5 }
 0x45f   :  { %9894 = vmatprep.subr.mxu1 %v10616_v46 }
 0x460   :  { %9867 = vmatmul.mubr.f32.vlgmr.msra.gmra.mrb[14].mxu0 %v11171_v58 }
 0x461   :  { %9870 = vmatpush3.msra.mxu0 %v11165_v29  ;;  %9871 = vmatprep.mubr.msk.f32.mxu0 %vm10617_vm1, %v10616_v46 }
 0x462   :  { %9874 = vmatprep.subr.mxu0 %v10616_v46 }
 0x463   :  { %v4272_v18 = vpop.xlane.xlu1 %4271 }
 0x464   :  { %10588 = vrcp.f32 %v4272_v18  ;;  %v8068_v18 = vsub.f32 %v7948_v4, %v7966_v6 }
 0x465   :  { %9892 = vmatmul.mubr.f32.vlgmr.msra.gmra.mrb[14].mxu1 %v11208_v42 }
 0x466   :  { %9895 = vmatpush3.msra.mxu1 %v6656_v8  ;;  %9896 = vmatprep.mubr.msk.f32.mxu1 %vm10617_vm1, %v10616_v46  ;;  %v11325_v8 = vpack.c.bf16 %v7966_v6, %v7963_v5 }
 0x467   :  { %9899 = vmatprep.subr.mxu1 %v10616_v46  ;;  %v7030_v19 = vpop.permute.xlu1 %7029 }
 0x468   :  { %9872 = vmatmul.mubr.f32.vlgmr.msra.gmra.mrb[14].mxu0 %v6193_v61  ;;  %v11231_v20 = vand.u32 4294901760, %v7030_v19 }
 0x469   :  { %9875 = vmatpush3.msra.mxu0 %v6204_v63  ;;  %9876 = vmatprep.mubr.msk.f32.mxu0 %vm10617_vm1, %v10616_v46  ;;  %v7945_v63 = vld [vmem:[%s11496_s1 + $0x8] sm:$0xff] }
 0x46a   :  { %9879 = vmatprep.subr.mxu0 %v10616_v46  ;;  %v11238_v23 = vsub.f32 %v7030_v19, %v11231_v20  ;;  %v7957_v2 = vand.u32 4294901760, %v7945_v63 }
 0x46c   :  { %v8047_v9 = vsub.f32 %v7945_v63, %v7957_v2 }
 0x46d   :  { %9897 = vmatmul.mubr.f32.vlgmr.msra.gmra.mrb[14].mxu1 %v6645_v11 }
 0x46e   :  { %v10589_v21 = vpop.eup %10588  ;;  %9900 = vmatpush3.msra.mxu1 %v11190_v3  ;;  %9901 = vmatprep.mubr.msk.f32.mxu1 %vm10617_vm1, %v10616_v46  ;;  %v8048_v11 = vand.u32 4294901760, %v8047_v9 }
 0x46f   :  { %v4289_v22 = vmul.f32 %v10589_v21, %v11070_v62  ;;  %9904 = vmatprep.subr.mxu1 %v10616_v46  ;;  %v7114_v62 = vand.u32 4294901760, %v11238_v23  ;;  %v8062_v21 = vand.u32 4294901760, %v8061_v17 }
 0x470   :  { %9877 = vmatmul.mubr.f32.vlgmr.msra.gmra.mrb[14].mxu0 %v11163_v57  ;;  %v8049_v15 = vsub.f32 %v8047_v9, %v8048_v11 }
 0x471   :  { %9880 = vmatpush3.msra.mxu0 %v11165_v29  ;;  %9881 = vmatprep.mubr.msk.f32.mxu0 %vm10617_vm1, %v10616_v46  ;;  %v7033_v51 = vsel %vm560_vm2, %v4289_v22, 0  ;;  %v7115_v27 = vsub.f32 %v11238_v23, %v7114_v62  ;;  %v8069_v22 = vand.u32 4294901760, %v8068_v18 }
 0x472   :  { %9914 = vmatprep.subr.mxu0 %v10616_v46  ;;  %v11247_v24 = vand.u32 4294901760, %v7033_v51  ;;  %v8050_v19 = vand.u32 4294901760, %v8049_v15 }
 0x473   :  { %v7116_v33 = vand.u32 4294901760, %v7115_v27 }
 0x474   :  { %v7102_v25 = vsub.f32 %v7033_v51, %v11247_v24 }
 0x475   :  { %9902 = vmatmul.mubr.f32.vlgmr.msra.gmra.mrb[14].mxu1 %v6646_v13 }
 0x476   :  { %9905 = vmatpush3.msra.mxu1 %v6657_v10  ;;  %9906 = vmatprep.mubr.msk.f32.mxu1 %vm10617_vm1, %v10616_v46  ;;  %v7103_v26 = vand.u32 4294901760, %v7102_v25 }
 0x477   :  { %9909 = vmatprep.subr.mxu1 %v10616_v46 }
 0x478   :  { %9882 = vmatmul.mubr.f32.vlgmr.msra.gmra.mrb[14].mxu0 %v11163_v57  ;;  %v7104_v28 = vsub.f32 %v7102_v25, %v7103_v26 }
 0x479   :  { %9915 = vmatpush3.msra.mxu0 %v11231_v20  ;;  %v4275_v30 = vpop.xlane.xlu0 %4274  ;;  %9916 = vmatprep.mubr.msk.f32.mxu0 %vm10617_vm1, %v10616_v46 }
 0x47a   :  { %10590 = vrcp.f32 %v4275_v30  ;;  %9919 = vmatprep.subr.mxu0 %v10616_v46  ;;  %v7105_v31 = vand.u32 4294901760, %v7104_v28 }
 0x47c   :  { %9917 = vmatmul.mubr.f32.vlgmr.msra.gmra.mrb[16].mxu0 %v7105_v31  ;;  %v11339_v31 = vpack.c.bf16 %v8068_v18, %v8061_v17 }
 0x47d   :  { %9920 = vmatpush3.msra.mxu0 %v7116_v33  ;;  %9907 = vmatmul.mubr.f32.vlgmr.msra.gmra.mrb[14].mxu1 %v11208_v42  ;;  %v7487_v35 = vpop.permute.xlu0 %7486 }
 0x47e   :  { %9910 = vmatpush3.msra.mxu1 %v11190_v3  ;;  %9921 = vmatprep.mubr.msk.f32.mxu0 %vm10617_vm1, %v10616_v46  ;;  %v7493_v32 = vand.u32 4294901760, %v7487_v35  ;;  %v7960_v3 = vand.u32 4294901760, %v7946_v0 }
 0x47f   :  { %9924 = vmatprep.subr.mxu0 %v10616_v46  ;;  %9911 = vmatprep.mubr.msk.f32.mxu1 %vm10617_vm1, %v10616_v46 }
 0x480   :  { %9944 = vmatprep.subr.mxu1 %v10616_v46  ;;  %v7570_v38 = vsub.f32 %v7487_v35, %v7493_v32  ;;  %v11323_v7 = vpack.c.bf16 %v7960_v3, %v7957_v2 }
 0x484   :  { %v10591_v36 = vpop.eup %10590  ;;  %9922 = vmatmul.mubr.f32.vlgmr.msra.gmra.mrb[16].mxu0 %v11247_v24 }
 0x485   :  { %v4291_v37 = vmul.f32 %v10591_v36, %v11091_v12  ;;  %9925 = vmatpush3.msra.mxu0 %v11238_v23  ;;  %9912 = vmatmul.mubr.f32.vlgmr.msra.gmra.mrb[14].mxu1 %v11208_v42  ;;  %v7571_v12 = vand.u32 4294901760, %v7570_v38  ;;  %v8054_v42 = vsub.f32 %v7946_v0, %v7960_v3 }
 0x486   :  { %9945 = vmatpush3.msra.mxu1 %v7493_v32  ;;  %9926 = vmatprep.mubr.msk.f32.mxu0 %vm10617_vm1, %v10616_v46 }
 0x487   :  { %9929 = vmatprep.subr.mxu0 %v10616_v46  ;;  %9946 = vmatprep.mubr.msk.f32.mxu1 %vm10617_vm1, %v10616_v46  ;;  %v7490_v39 = vsel %vm560_vm2, %v4291_v37, 0  ;;  %v7572_v44 = vsub.f32 %v7570_v38, %v7571_v12  ;;  %v8055_v13 = vand.u32 4294901760, %v8054_v42  ;;  %v11337_v30 = vpack.c.bf16 %v8054_v42, %v8047_v9 }
 0x488   :  { %9949 = vmatprep.subr.mxu1 %v10616_v46  ;;  %v7558_v40 = vand.u32 4294901760, %v7490_v39 }
 0x489   :  { %v7573_v48 = vand.u32 4294901760, %v7572_v44  ;;  %v8056_v16 = vsub.f32 %v8054_v42, %v8055_v13  ;;  %v8489_v44 = vld [vmem:[%s11497_s2 + $0x10] sm:$0xff] }
 0x48a   :  { %v7559_v41 = vsub.f32 %v7490_v39, %v7558_v40 }
 0x48c   :  { %9927 = vmatmul.mubr.f32.vlgmr.msra.gmra.mrb[16].mxu0 %v7102_v25  ;;  %v7560_v43 = vand.u32 4294901760, %v7559_v41 }
 0x48d   :  { %9930 = vmatpush3.msra.mxu0 %v11231_v20  ;;  %9931 = vmatprep.mubr.msk.f32.mxu0 %vm10617_vm1, %v10616_v46 }
 0x48e   :  { %v7561_v45 = vsub.f32 %v7559_v41, %v7560_v43  ;;  %9934 = vmatprep.subr.mxu0 %v10616_v46 }
 0x490   :  { %v7562_v47 = vand.u32 4294901760, %v7561_v45 }
 0x492   :  { %9947 = vmatmul.mubr.f32.vlgmr.msra.gmra.mrb[16].mxu1 %v7562_v47 }
 0x493   :  { %9950 = vmatpush3.msra.mxu1 %v7573_v48  ;;  %9951 = vmatprep.mubr.msk.f32.mxu1 %vm10617_vm1, %v10616_v46  ;;  %v8490_v48 = vld [vmem:[%s11497_s2 + $0x18] sm:$0xff] }
 0x494   :  { %9932 = vmatmul.mubr.f32.vlgmr.msra.gmra.mrb[16].mxu0 %v7103_v26  ;;  %9954 = vmatprep.subr.mxu1 %v10616_v46 }
 0x495   :  { %9935 = vmatpush3.msra.mxu0 %v7114_v62  ;;  %9936 = vmatprep.mubr.msk.f32.mxu0 %vm10617_vm1, %v10616_v46  ;;  %v8070_v62 = vsub.f32 %v8068_v18, %v8069_v22  ;;  %v8491_v18 = vld [vmem:[%s11497_s2 + $0x20] sm:$0xff] }
 0x496   :  { %9939 = vmatprep.subr.mxu0 %v10616_v46 }
 0x497   :  { %v8071_v26 = vand.u32 4294901760, %v8070_v62 }
 0x49a   :  { %9952 = vmatmul.mubr.f32.vlgmr.msra.gmra.mrb[16].mxu1 %v7558_v40 }
 0x49b   :  { %9955 = vmatpush3.msra.mxu1 %v7570_v38  ;;  %9956 = vmatprep.mubr.msk.f32.mxu1 %vm10617_vm1, %v10616_v46 }
 0x49c   :  { %9937 = vmatmul.mubr.f32.vlgmr.msra.gmra.mrb[16].mxu0 %v11247_v24  ;;  %9959 = vmatprep.subr.mxu1 %v10616_v46 }
 0x49d   :  { %9940 = vmatpush3.msra.mxu0 %v11231_v20  ;;  %9941 = vmatprep.mubr.msk.f32.mxu0 %vm10617_vm1, %v10616_v46  ;;  %v8057_v20 = vand.u32 4294901760, %v8056_v16 }
 0x49e   :  { %10203 = vmatprep.subr.bf16.mxu0 %v11323_v7 }
 0x49f   :  { %v11333_v51 = vpack.c.bf16 %v8057_v20, %v8050_v19  ;;  %v8519_v19 = vand.u32 4294901760, %v8491_v18 }
 0x4a2   :  { %9957 = vmatmul.mubr.f32.vlgmr.msra.gmra.mrb[16].mxu1 %v7559_v41  ;;  %v8487_v41 = vld [vmem:[%s11497_s2] sm:$0xff] }
 0x4a3   :  { %9960 = vmatpush3.msra.mxu1 %v7493_v32  ;;  %9961 = vmatprep.mubr.msk.f32.mxu1 %vm10617_vm1, %v10616_v46  ;;  %v8507_v45 = vand.u32 4294901760, %v8487_v41 }
 0x4a4   :  { %9942 = vmatmul.mubr.f32.vlgmr.msra.gmra.mrb[16].mxu0 %v11247_v24  ;;  %9964 = vmatprep.subr.mxu1 %v10616_v46  ;;  %v8063_v24 = vsub.f32 %v8061_v17, %v8062_v21 }
 0x4a5   :  { %10205 = vmatpush3.bf16.msra.mxu0 %v11323_v7 }
 0x4a6   :  { %10207 = vmatprep.subr.bf16.mxu0 %v11325_v8  ;;  %v8064_v25 = vand.u32 4294901760, %v8063_v24 }
 0x4a8   :  { %v10214_v28 = vpack.c.bf16 %v8071_v26, %v8064_v25 }
 0x4a9   :  { %10209 = vmatpush3.bf16.msra.mxu0 %v11325_v8 }
 0x4aa   :  { %9962 = vmatmul.mubr.f32.vlgmr.msra.gmra.mrb[16].mxu1 %v7560_v43  ;;  %10211 = vmatprep.subr.bf16.mxu0 %v11333_v51  ;;  %v8488_v43 = vld [vmem:[%s11497_s2 + $0x8] sm:$0xff] }
 0x4ab   :  { %9965 = vmatpush3.msra.mxu1 %v7571_v12  ;;  %9966 = vmatprep.mubr.msk.f32.mxu1 %vm10617_vm1, %v10616_v46  ;;  %v11353_v12 = vpack.c.bf16 %v8069_v22, %v8062_v21  ;;  %v8510_v47 = vand.u32 4294901760, %v8488_v43  ;;  %v8493_v22 = vld [vmem:[%s11497_s2 + $0x30] sm:$0xff] }
 0x4ac   :  { %9969 = vmatprep.subr.mxu1 %v10616_v46  ;;  %v8525_v62 = vand.u32 4294901760, %v8493_v22 }
 0x4b2   :  { %9967 = vmatmul.mubr.f32.vlgmr.msra.gmra.mrb[16].mxu1 %v7558_v40 }
 0x4b3   :  { %9970 = vmatpush3.msra.mxu1 %v7493_v32  ;;  %9971 = vmatprep.mubr.msk.f32.mxu1 %vm10617_vm1, %v10616_v46 }
 0x4ba   :  { %9972 = vmatmul.mubr.f32.vlgmr.msra.gmra.mrb[16].mxu1 %v7558_v40  ;;  %v11351_v40 = vpack.c.bf16 %v8055_v13, %v8048_v11 }
 0x4c0   :  { %v4740_v34 = vpop.f32.mrb[10].mxu0 }
 0x4c1   :  { %4744 = vst.msk [vmem:[#allocation3] sm:$0xff] %vm560_vm2, %v4740_v34  ;;  %v9763_v50 = vpop.f32.mrb[11].mxu0  ;;  %v8513_v34 = vand.u32 4294901760, %v8489_v44 }
 0x4c2   :  { %v8516_v50 = vand.u32 4294901760, %v8490_v48 }
 0x4ea   :  { %v5193_v49 = vpop.f32.mrb[10].mxu1 }
 0x4eb   :  { %v9793_v52 = vpop.f32.mrb[11].mxu1  ;;  %5198 = vrot.lane.b32.xlu1 %v5193_v49, %s10629_s9  ;;  %v11367_v49 = vpack.c.bf16 %v8510_v47, %v8507_v45 }
 0x4ec   :  { %v11369_v52 = vsub.f32 %v8487_v41, %v8507_v45 }
 0x51f   :  { %v5651_v53 = vpop.f32.mrb[12].mxu0 }
 0x520   :  { %5656 = vrot.lane.b32.xlu1 %v5651_v53, %s10630_s10  ;;  %v9823_v54 = vpop.f32.mrb[13].mxu0  ;;  %v11371_v53 = vsub.f32 %v8488_v43, %v8510_v47 }
 0x521   :  { %v11373_v54 = vsub.f32 %v8489_v44, %v8513_v34 }
 0x522   :  { %v10282_v41 = vpack.c.bf16 %v11371_v53, %v11369_v52 }
 0x523   :  { %v6109_v55 = vpop.f32.mrb[12].mxu1 }
 0x524   :  { %v9853_v56 = vpop.f32.mrb[13].mxu1  ;;  %6114 = vrot.lane.b32.xlu1 %v6109_v55, %s10631_s11  ;;  %v11375_v55 = vpack.c.bf16 %v8516_v50, %v8513_v34 }
 0x525   :  { %v11377_v56 = vsub.f32 %v8490_v48, %v8516_v50  ;;  %v8486_v50 = vld [vmem:[%s11496_s1 + $0x40] ss:$0 sm:$0xff] }
 0x54b   :  { %v6567_v46 = vpop.f32.mrb[14].mxu0 }
 0x54c   :  { %6571 = vst.msk [vmem:[#allocation3 + $0x8] sm:$0xff] %vm560_vm2, %v6567_v46  ;;  %v9883_v57 = vpop.f32.mrb[15].mxu0  ;;  %v8602_v46 = vand.u32 4294901760, %v11369_v52 }
 0x54d   :  { %v8609_v57 = vand.u32 4294901760, %v11371_v53 }
 0x558   :  { %v7020_v29 = vpop.f32.mrb[14].mxu1 }
 0x559   :  { %v9913_v58 = vpop.f32.mrb[15].mxu1  ;;  %7025 = vrot.lane.b32.xlu0 %v7020_v29, %s10629_s9  ;;  %v8616_v29 = vand.u32 4294901760, %v11373_v54 }
 0x55a   :  { %v8623_v58 = vand.u32 4294901760, %v11377_v56 }
 0x55c   :  { %v8624_v63 = vsub.f32 %v11377_v56, %v8623_v58 }
 0x55d   :  { %v5199_v59 = vpop.permute.xlu1 %5198 }
 0x55e   :  { %5202 = vst.msk [vmem:[#allocation3] sm:$0xff] %vm5201_vm3, %v5199_v59  ;;  %v8603_v59 = vsub.f32 %v11369_v52, %v8602_v46  ;;  %v8625_v3 = vand.u32 4294901760, %v8624_v63 }
 0x560   :  { %v8604_v0 = vand.u32 4294901760, %v8603_v59  ;;  %v7949_v59 = vld [vmem:[%s11496_s1 + $0x48] ss:$0 sm:$0xff]  ;;  %s10633_s1 = smov [#allocation4]  }
 0x561   :  { %s9093_s13 = sshll.u32 %s10633_s1, 4  ;;  %s9094_s13 = int_to_ptr.vmem [resolvable:$true] %s9093_s13 }
 0x562   :  { %s10592_s14 = scalar_lea.vmem %s9094_s13, 256  ;;  %p10597_p1 = scmp.lt.s32.totalorder %s9094_s13, %s9094_s13 }
 0x563   :  { %p10593_p0 = scmp.ne.s32.totalorder %s9094_s13, %s10592_s14  ;;  %p10598_p2 = scmp.lt.s32.totalorder %s10592_s14, %s10592_s14 }
 0x565   :  { %p10599_p3 = por %p10598_p2, %p10597_p1 }
 0x567   :  { %p10600_p4 = pnand %p10599_p3, %p10593_p0 }
 0x577   :  { %v7477_v60 = vpop.f32.mrb[16].mxu0 }
 0x578   :  { %7482 = vrot.lane.b32.xlu0 %v7477_v60, %s10630_s10  ;;  %v9943_v61 = vpop.f32.mrb[17].mxu0  ;;  %v8610_v60 = vsub.f32 %v11371_v53, %v8609_v57  ;;  %s10632_s10 = smov 32  }
 0x579   :  { %v8617_v61 = vsub.f32 %v11373_v54, %v8616_v29 }
 0x57a   :  { %v8611_v1 = vand.u32 4294901760, %v8610_v60 }
 0x57b   :  { %v8618_v2 = vand.u32 4294901760, %v8617_v61 }
 0x57c   :  { %v10266_v4 = vpack.c.bf16 %v8611_v1, %v8604_v0  ;;  %8496 = vrot.lane.b32.xlu0 %v8486_v50, %s10632_s10 }
 0x57d   :  { %v10270_v5 = vpack.c.bf16 %v8625_v3, %v8618_v2 }
 0x57e   :  { %10267 = vmatprep.subr.bf16.mxu1 %v10266_v4 }
 0x57f   :  { %10269 = vmatpush3.bf16.msra.mxu1 %v10266_v4 }
 0x580   :  { %10271 = vmatprep.subr.bf16.mxu1 %v10270_v5 }
 0x583   :  { %10273 = vmatpush3.bf16.msra.mxu1 %v10270_v5 }
 0x58d   :  { %v7934_v10 = vpop.f32.mrb[16].mxu1 }
 0x58e   :  { %v9973_v14 = vpop.f32.mrb[17].mxu1  ;;  %7939 = vrot.lane.b32.xlu1 %v7934_v10, %s10631_s11 }
 0x592   :  { %v5657_v23 = vpop.permute.xlu1 %5656 }
 0x593   :  { %5660 = vst.msk [vmem:[#allocation3] sm:$0xff] %vm5659_vm4, %v5657_v23  ;;  %v8494_v23 = vld [vmem:[%s11497_s2 + $0x38] sm:$0xff] }
 0x594   :  { %v8528_v25 = vand.u32 4294901760, %v8494_v23 }
 0x596   :  { %v6115_v27 = vpop.permute.xlu1 %6114  ;;  %v11442_v44 = vpack.c.bf16 %v8528_v25, %v8525_v62 }
 0x597   :  { %6118 = vst.msk [vmem:[#allocation3] sm:$0xff] %vm6117_vm5, %v6115_v27 }
 0x59e   :  { %v7943_v33 = vld [vmem:[#allocation3] sm:$0xff] }
 0x59f   :  { %v7951_v35 = vsel %vm22_vm0, %v7943_v33, 0 }
 0x5a0   :  { %v11342_v32 = vand.u32 4294901760, %v7951_v35 }
 0x5a2   :  { %v11345_v36 = vsub.f32 %v7951_v35, %v11342_v32 }
 0x5a4   :  { %v8027_v37 = vand.u32 4294901760, %v11345_v36 }
 0x5a6   :  { %v8028_v38 = vsub.f32 %v11345_v36, %v8027_v37 }
 0x5a8   :  { %v8029_v39 = vand.u32 4294901760, %v8028_v38 }
 0x5aa   :  { %9982 = vmatprep.mubr.f32.mxu0 %v8029_v39 }
 0x5cb   :  { %v7026_v6 = vpop.permute.xlu0 %7025 }
 0x5cc   :  { %7028 = vst.msk [vmem:[#allocation3 + $0x8] sm:$0xff] %vm5201_vm3, %v7026_v6 }
 0x5ea   :  { %v7483_v9 = vpop.permute.xlu0 %7482 }
 0x5eb   :  { %7485 = vst.msk [vmem:[#allocation3 + $0x8] sm:$0xff] %vm5659_vm4, %v7483_v9 }
 0x600   :  { %v7940_v42 = vpop.permute.xlu1 %7939 }
 0x601   :  { %7942 = vst.msk [vmem:[#allocation3 + $0x8] sm:$0xff] %vm6117_vm5, %v7940_v42  ;;  %v10286_v42 = vpack.c.bf16 %v11377_v56, %v11373_v54  ;;  %v8497_v54 = vpop.permute.xlu0 %8496 }
 0x608   :  { %v7944_v10 = vld [vmem:[#allocation3 + $0x8] sm:$0xff] }
 0x609   :  { %v7954_v11 = vsel %vm22_vm0, %v7944_v10, 0 }
 0x60a   :  { %v8035_v13 = vand.u32 4294901760, %v7954_v11 }
 0x60c   :  { %v8036_v14 = vsub.f32 %v7954_v11, %v8035_v13 }
 0x60e   :  { %v8037_v15 = vand.u32 4294901760, %v8036_v14 }
 0x610   :  { %v8038_v16 = vsub.f32 %v8036_v14, %v8037_v15 }
 0x612   :  { %v8039_v17 = vand.u32 4294901760, %v8038_v16 }
 0x614   :  { %9983 = vmatmul.mubr.f32.vlgmr.msra.gmra.mrb[18].mxu0 %v8039_v17 }
 0x615   :  { %10213 = vmatpush3.bf16.msra.mxu0 %v11333_v51  ;;  %9993 = vmatprep.mubr.f32.mxu0 %v11342_v32 }
 0x616   :  { %10215 = vmatprep.subr.bf16.mxu0 %v10214_v28 }
 0x619   :  { %10217 = vmatpush3.bf16.msra.mxu0 %v10214_v28  ;;  %v8643_v28 = vsub.f32 %v8493_v22, %v8525_v62 }
 0x61a   :  { %10219 = vmatprep.subr.bf16.mxu0 %v11337_v30 }
 0x61b   :  { %v8644_v35 = vand.u32 4294901760, %v8643_v28 }
 0x61c   :  { %9994 = vmatmul.mubr.f32.vlgmr.msra.gmra.mrb[18].mxu0 %v8035_v13 }
 0x61d   :  { %10221 = vmatpush3.bf16.msra.mxu0 %v11337_v30  ;;  %10004 = vmatprep.mubr.f32.mxu0 %v11345_v36  ;;  %v8650_v30 = vsub.f32 %v8494_v23, %v8528_v25 }
 0x61e   :  { %10223 = vmatprep.subr.bf16.mxu0 %v11339_v31 }
 0x61f   :  { %v10294_v47 = vpack.c.bf16 %v8650_v30, %v8643_v28 }
 0x621   :  { %10225 = vmatpush3.bf16.msra.mxu0 %v11339_v31 }
 0x622   :  { %10227 = vmatprep.subr.bf16.mxu0 %v11323_v7 }
 0x624   :  { %10005 = vmatmul.mubr.f32.vlgmr.msra.gmra.mrb[18].mxu0 %v8036_v14 }
 0x625   :  { %10229 = vmatpush3.bf16.msra.mxu0 %v11323_v7  ;;  %10015 = vmatprep.mubr.f32.mxu0 %v8027_v37  ;;  %v8645_v37 = vsub.f32 %v8643_v28, %v8644_v35 }
 0x626   :  { %10231 = vmatprep.subr.bf16.mxu0 %v11325_v8 }
 0x627   :  { %v8646_v39 = vand.u32 4294901760, %v8645_v37 }
 0x629   :  { %10233 = vmatpush3.bf16.msra.mxu0 %v11325_v8 }
 0x62a   :  { %10235 = vmatprep.subr.bf16.mxu0 %v11351_v40 }
 0x62c   :  { %10016 = vmatmul.mubr.f32.vlgmr.msra.gmra.mrb[18].mxu0 %v8037_v15 }
 0x62d   :  { %10237 = vmatpush3.bf16.msra.mxu0 %v11351_v40  ;;  %10026 = vmatprep.mubr.f32.mxu0 %v11342_v32 }
 0x62e   :  { %10239 = vmatprep.subr.bf16.mxu0 %v11353_v12 }
 0x631   :  { %10241 = vmatpush3.bf16.msra.mxu0 %v11353_v12 }
 0x632   :  { %10243 = vmatprep.subr.bf16.mxu0 %v11323_v7 }
 0x634   :  { %10027 = vmatmul.mubr.f32.vlgmr.msra.gmra.mrb[18].mxu0 %v8035_v13 }
 0x635   :  { %10245 = vmatpush3.bf16.msra.mxu0 %v11323_v7  ;;  %10037 = vmatprep.mubr.f32.mxu0 %v11342_v32  ;;  %v8492_v7 = vld [vmem:[%s11497_s2 + $0x28] sm:$0xff]  ;;  %v8651_v32 = vand.u32 4294901760, %v8650_v30 }
 0x636   :  { %10247 = vmatprep.subr.bf16.mxu0 %v11325_v8  ;;  %v8522_v20 = vand.u32 4294901760, %v8492_v7 }
 0x637   :  { %v8652_v38 = vsub.f32 %v8650_v30, %v8651_v32  ;;  %v10326_v34 = vpack.c.bf16 %v8651_v32, %v8644_v35 }
 0x638   :  { %v8636_v21 = vsub.f32 %v8492_v7, %v8522_v20  ;;  %v11440_v43 = vpack.c.bf16 %v8522_v20, %v8519_v19  ;;  %v10318_v7 = vpack.c.bf16 %v8623_v58, %v8616_v29 }
 0x639   :  { %10249 = vmatpush3.bf16.msra.mxu0 %v11325_v8  ;;  %v8629_v8 = vsub.f32 %v8491_v18, %v8519_v19  ;;  %v8653_v40 = vand.u32 4294901760, %v8652_v38  ;;  %v10314_v18 = vpack.c.bf16 %v8609_v57, %v8602_v46 }
 0x63a   :  { %10251 = vmatprep.subr.bf16.mxu0 %v11367_v49  ;;  %v8637_v24 = vand.u32 4294901760, %v8636_v21 }
 0x63b   :  { %v8630_v51 = vand.u32 4294901760, %v8629_v8  ;;  %v10278_v12 = vpack.c.bf16 %v8653_v40, %v8646_v39  ;;  %v10290_v45 = vpack.c.bf16 %v8636_v21, %v8629_v8 }
 0x63c   :  { %10038 = vmatmul.mubr.f32.vlgmr.msra.gmra.mrb[18].mxu0 %v8035_v13  ;;  %v8638_v27 = vsub.f32 %v8636_v21, %v8637_v24 }
 0x63d   :  { %10253 = vmatpush3.bf16.msra.mxu0 %v11367_v49  ;;  %v8631_v26 = vsub.f32 %v8629_v8, %v8630_v51  ;;  %v10322_v48 = vpack.c.bf16 %v8637_v24, %v8630_v51 }
 0x63e   :  { %10255 = vmatprep.subr.bf16.mxu0 %v11375_v55  ;;  %v8639_v33 = vand.u32 4294901760, %v8638_v27 }
 0x63f   :  { %v8632_v31 = vand.u32 4294901760, %v8631_v26 }
 0x641   :  { %10257 = vmatpush3.bf16.msra.mxu0 %v11375_v55  ;;  %v10274_v36 = vpack.c.bf16 %v8639_v33, %v8632_v31 }
 0x642   :  { %10259 = vmatprep.subr.bf16.mxu0 %v11440_v43 }
 0x643   :  { %10275 = vmatprep.subr.bf16.mxu1 %v10274_v36 }
 0x644   :  { %10277 = vmatpush3.bf16.msra.mxu1 %v10274_v36 }
 0x645   :  { %10279 = vmatprep.subr.bf16.mxu1 %v10278_v12  ;;  %10261 = vmatpush3.bf16.msra.mxu0 %v11440_v43 }
 0x646   :  { %10263 = vmatprep.subr.bf16.mxu0 %v11442_v44 }
 0x648   :  { %10281 = vmatpush3.bf16.msra.mxu1 %v10278_v12 }
 0x649   :  { %10283 = vmatprep.subr.bf16.mxu1 %v10282_v41  ;;  %10265 = vmatpush3.bf16.msra.mxu0 %v11442_v44 }
 0x70f   :  { %v10039_v60 = vpop.f32.mrb[18].mxu0 }
 0x710   :  { %v10349_v61 = vadd.f32 %v10039_v60, %v7949_v59  ;;  %v8474_v63 = vpop.f32.mrb[19].mxu0 }
 0x711   :  { %v10350_v0 = vadd.f32 %v8474_v63, %v7949_v59 }
 0x712   :  { %v8485_v1 = vmax.f32 %v10349_v61, 0.0 }
 0x713   :  { %v8484_v2 = vmax.f32 %v10350_v0, 0.0 }
 0x714   :  { %v8504_v3 = vsel %vm8499_vm6, %v8485_v1, 0 }
 0x715   :  { %v8589_v4 = vand.u32 4294901760, %v8504_v3  ;;  %v8501_v5 = vsel %vm8499_vm6, %v8484_v2, 0 }
 0x716   :  { %v8579_v6 = vand.u32 4294901760, %v8501_v5 }
 0x717   :  { %v8590_v9 = vsub.f32 %v8504_v3, %v8589_v4 }
 0x718   :  { %10075 = vmatprep.mubr.f32.mxu1 %v8579_v6  ;;  %v8580_v10 = vsub.f32 %v8501_v5, %v8579_v6 }
 0x719   :  { %v8591_v11 = vand.u32 4294901760, %v8590_v9  ;;  %10076 = vmatmul.mubr.f32.vlgmr.msra.gmra.mrb[18].mxu1 %v8589_v4 }
 0x71a   :  { %10285 = vmatpush3.bf16.msra.mxu1 %v10282_v41  ;;  %10094 = vmatprep.mubr.f32.mxu1 %v8580_v10  ;;  %v8581_v13 = vand.u32 4294901760, %v8580_v10 }
 0x71b   :  { %10287 = vmatprep.subr.bf16.mxu1 %v10286_v42  ;;  %v8592_v14 = vsub.f32 %v8590_v9, %v8591_v11 }
 0x71c   :  { %v8582_v15 = vsub.f32 %v8580_v10, %v8581_v13 }
 0x71d   :  { %v8593_v17 = vand.u32 4294901760, %v8592_v14 }
 0x71e   :  { %10289 = vmatpush3.bf16.msra.mxu1 %v10286_v42  ;;  %v8583_v16 = vand.u32 4294901760, %v8582_v15 }
 0x71f   :  { %10291 = vmatprep.subr.bf16.mxu1 %v10290_v45 }
 0x720   :  { %10056 = vmatprep.mubr.f32.mxu0 %v8583_v16 }
 0x721   :  { %10057 = vmatmul.mubr.f32.vlgmr.msra.gmra.mrb[20].mxu0 %v8593_v17 }
 0x722   :  { %10293 = vmatpush3.bf16.msra.mxu1 %v10290_v45 }
 0x723   :  { %10295 = vmatprep.subr.bf16.mxu1 %v10294_v47 }
 0x726   :  { %10297 = vmatpush3.bf16.msra.mxu1 %v10294_v47 }
 0x727   :  { %10299 = vmatprep.subr.bf16.mxu1 %v11367_v49 }
 0x729   :  { %10095 = vmatmul.mubr.f32.vlgmr.msra.gmra.mrb[18].mxu1 %v8590_v9 }
 0x72a   :  { %10301 = vmatpush3.bf16.msra.mxu1 %v11367_v49  ;;  %10113 = vmatprep.mubr.f32.mxu1 %v8581_v13 }
 0x72b   :  { %10303 = vmatprep.subr.bf16.mxu1 %v11375_v55 }
 0x72e   :  { %10305 = vmatpush3.bf16.msra.mxu1 %v11375_v55 }
 0x72f   :  { %10307 = vmatprep.subr.bf16.mxu1 %v11440_v43 }
 0x732   :  { %10309 = vmatpush3.bf16.msra.mxu1 %v11440_v43 }
 0x733   :  { %10311 = vmatprep.subr.bf16.mxu1 %v11442_v44 }
 0x736   :  { %10313 = vmatpush3.bf16.msra.mxu1 %v11442_v44 }
 0x737   :  { %10315 = vmatprep.subr.bf16.mxu1 %v10314_v18 }
 0x739   :  { %10114 = vmatmul.mubr.f32.vlgmr.msra.gmra.mrb[18].mxu1 %v8591_v11 }
 0x73a   :  { %10317 = vmatpush3.bf16.msra.mxu1 %v10314_v18  ;;  %10132 = vmatprep.mubr.f32.mxu1 %v8579_v6 }
 0x73b   :  { %10319 = vmatprep.subr.bf16.mxu1 %v10318_v7 }
 0x73e   :  { %10321 = vmatpush3.bf16.msra.mxu1 %v10318_v7 }
 0x73f   :  { %10323 = vmatprep.subr.bf16.mxu1 %v10322_v48 }
 0x742   :  { %10325 = vmatpush3.bf16.msra.mxu1 %v10322_v48 }
 0x743   :  { %10327 = vmatprep.subr.bf16.mxu1 %v10326_v34 }
 0x746   :  { %10329 = vmatpush3.bf16.msra.mxu1 %v10326_v34 }
 0x747   :  { %10331 = vmatprep.subr.bf16.mxu1 %v11367_v49 }
 0x749   :  { %10133 = vmatmul.mubr.f32.vlgmr.msra.gmra.mrb[18].mxu1 %v8589_v4 }
 0x74a   :  { %10333 = vmatpush3.bf16.msra.mxu1 %v11367_v49  ;;  %10151 = vmatprep.mubr.f32.mxu1 %v8579_v6 }
 0x74b   :  { %10335 = vmatprep.subr.bf16.mxu1 %v11375_v55 }
 0x74e   :  { %10337 = vmatpush3.bf16.msra.mxu1 %v11375_v55 }
 0x74f   :  { %10339 = vmatprep.subr.bf16.mxu1 %v11440_v43 }
 0x752   :  { %10341 = vmatpush3.bf16.msra.mxu1 %v11440_v43 }
 0x753   :  { %10343 = vmatprep.subr.bf16.mxu1 %v11442_v44 }
 0x756   :  { %10345 = vmatpush3.bf16.msra.mxu1 %v11442_v44 }
 0x759   :  { %10152 = vmatmul.mubr.f32.vlgmr.msra.gmra.mrb[18].mxu1 %v8589_v4 }
 0x7f4   :  { %v10058_v52 = vpop.f32.mrb[20].mxu0 }
 0x7f5   :  { %v8585_v53 = vpop.f32.mrb[21].mxu0  ;;  %v8596_v56 = vadd.f32 %v10058_v52, %v8497_v54 }
 0x7f6   :  { %v8586_v49 = vadd.f32 %v8585_v53, %v8497_v54 }
 0x82c   :  { %v10153_v46 = vpop.f32.mrb[18].mxu1 }
 0x82d   :  { %v10352_v57 = vadd.f32 %v10153_v46, %v8596_v56  ;;  %v9076_v29 = vpop.f32.mrb[19].mxu1 }
 0x82e   :  { %v10354_v55 = vadd.f32 %v9076_v29, %v8586_v49 }
 0x82f   :  { %9087 = vst.msk [vmem:[#allocation4 + $0x8] sm:$0xff] %vm22_vm0, %v10352_v57 }
 0x830   :  { %9086 = vst.msk [vmem:[#allocation4] sm:$0xff] %vm22_vm0, %v10354_v55 }
 0x831   :  { %10603 = shalt.err (!%p10600_p4)
}
 0x832   :  { %s10604_s17 = scalar_lea.hbm %s11498_s3, 256 }
 0x833   :  { %p10605_p5 = scmp.ne.s32.totalorder %s11498_s3, %s10604_s17  ;;  %p10608_p6 = scmp.lt.u32.totalorder %s10604_s17, %s11498_s3 }
 0x835   :  { %p10610_p7 = pnand %p10608_p6, %p10605_p5 }
 0x837   :  { %10613 = shalt.err (!%p10610_p7)
}
 0x838   :  { %s10634_s22 = smov 128  }
 0x839   :  { %9099 = dma.vmem_to_hbm [thread:$0]  %s9094_s13, 256, %s11498_s3, [#allocation5], %s10634_s22, %s10634_s22, %s10629_s9  }
 0x83a   :  { %10614 = dma.done.wait [#allocation5], 256  }
 0x83b   :  { %10615 = vsyncadd [#allocation5], 4294967040 }
 0x83c   :  { %9103 = vsyncpa [#allocation5], 1 }

</bundles_post_ra>
